<compile_context>
chip_gen: v7x
topology: tpu7x:2x2x1
jax: 0.10.0
libtpu: 0.0.40
codegen_flags: <defaults>
</compile_context>

<pallas_src>
import functools

import jax
import jax.numpy as jnp
from jax import lax
from jax.experimental import pallas as pl
from jax.experimental.pallas import tpu as pltpu

GAMMA = 0.01      # prox-grad step damping in the denominator
LAM = 1e-3        # soft-threshold strength (stand-in denoiser prox)
MAX_ITER = 20     # fixed-point solver iterations
_EPS = 1e-5


# ---------------------------------------------------------------------------
# Kernel
# ---------------------------------------------------------------------------
def _make_kernel(init_mode):
    """init_mode: 'input' (z0 DMA'd), 'zeros' (zero cube), 'at' (x * Phi)."""

    def kernel(*refs):
        if init_mode == "input":
            x_ref, phi_ref, phisum_ref, z0_ref, z_out_ref, dsq_ref, nsq_ref = refs
        else:
            x_ref, phi_ref, phisum_ref, z_out_ref, dsq_ref, nsq_ref = refs

        x = x_ref[...]                      # (1, 1,  T)
        phi = phi_ref[...]                  # (1, Fp, T)

        # Loop-invariant denominator, hoisted: one exact 1/x per grid step.
        inv = 1.0 / (phisum_ref[...] + GAMMA)          # (1, 1, T)

        def f_step(z):
            # GAP projection: yb = A(z); correction; z + At(correction)
            yb = jnp.sum(phi * z, axis=1, keepdims=True)   # cross-sublane reduce -> XLU
            z1 = z + phi * ((x - yb) * inv)
            # Soft threshold in clip form: sign(z1)*max(|z1|-LAM,0) == z1 - clip(z1,-LAM,LAM)
            return z1 - jnp.clip(z1, -LAM, LAM)

        if init_mode == "input":
            z0 = z0_ref[...]
        elif init_mode == "at":
            z0 = x * phi                    # At(y, Phi), computed in-kernel (no DMA)
        else:
            z0 = jnp.zeros_like(phi)

        # "solver": plain Picard iteration, fully unrolled so the LLO scheduler sees
        # the whole dependence chain (no per-iteration scalar/branch overhead).
        # TODO(synk): Anderson acceleration + tolerance-based early exit not ported.
        z_star = lax.fori_loop(0, MAX_ITER, lambda _, z: f_step(z), z0, unroll=True)

        # Extra application of f outside the solver (matches `z = self.f(z, ...)`).
        z_next = f_step(z_star)
        z_out_ref[...] = z_next.astype(z_out_ref.dtype)

        # Residual: only lane-dense per-tile partial sums (reduced over frames);
        # sqrt / ratio finished in the JAX wrapper (no in-kernel cross-lane reduce).
        d = z_next - z_star
        dsq_ref[...] = jnp.sum(d * d, axis=1, keepdims=True)
        nsq_ref[...] = jnp.sum(z_next * z_next, axis=1, keepdims=True)

    return kernel


# ---------------------------------------------------------------------------
# Sizing helpers (chip-aware)
# ---------------------------------------------------------------------------
def _vmem_capacity_bytes():
    try:
        info = pltpu.get_tpu_info()
        cap = getattr(info, "vmem_capacity_bytes", None)
        if cap:
            return int(cap)
    except Exception:
        pass
    return 64 << 20   # conservative fallback (v7x per-TensorCore)


def _vmem_bytes_estimate(Fp, T, with_z0):
    """Per-grid-step f32 footprint: double-buffered blocks + live temps (unrolled loop)."""
    n_big = (2 if with_z0 else 1) + 1            # phi (+ z0) inputs, z_out output
    blocks = 2 * (n_big * Fp * T + 4 * T)        # rows: x, phi_sum, dsq, nsq
    temps = 5 * Fp * T                           # z, z1, products, z_star/z_next overlap
    return 4 * (blocks + temps)


def _pick_spatial_tile(HW, Fp, with_z0, budget_bytes):
    """Largest multiple-of-128 tile dividing HW whose footprint fits the budget."""
    assert HW % 128 == 0
    m = HW // 128
    for d in range(m, 0, -1):
        if m % d == 0 and _vmem_bytes_estimate(Fp, 128 * d, with_z0) <= budget_bytes:
            return 128 * d
    return 128   # may overshoot budget for huge Fp; vmem_limit below reflects the estimate


def _split_for_min_programs(T, HW, B):
    """Cap T so grid has >= 2 programs (both v7x TCs busy); harmless on 1-TC chips."""
    if B * (HW // T) >= 2:
        return T
    m = HW // 128
    for d in range(m, 0, -1):
        if m % d == 0 and B * (m // d) >= 2:
            return 128 * d
    return T


# ---------------------------------------------------------------------------
# Wrapper
# ---------------------------------------------------------------------------
def deq_fixed_point(x, Phi, Phi_sum, initial_point=None, *, spatial_tile=None):
    """x: (B,H,W) measurement, Phi: (B,F,H,W) mask, Phi_sum: (B,H,W).

    initial_point: None  -> zero cube, computed in-kernel (no DMA)
                   "At"  -> x * Phi  (At(y, Phi)), computed in-kernel (no DMA)
                   array -> explicit (B,F,H,W) init, DMA'd as a 4th input
    Returns (z: (B,F,H,W), forward_res: (B,)).
    """
    B, F, H, W = Phi.shape
    HW = H * W
    assert HW % 128 == 0, "H*W must be a multiple of 128 (lane axis)"

    # Pad frames to a multiple of 8: full sublane packing for f32 vregs and an
    # XLU cross-sublane frame reduce (off the saturated VALU).
    Fp = ((F + 7) // 8) * 8

    if initial_point is None:
        # TODO(synk): torch default is zeros_like(x) (measurement-shaped); z lives in
        # the video cube here, so the equivalent zero cube is used.
        init_mode = "zeros"
    elif isinstance(initial_point, str):
        assert initial_point.lower() in ("at", "aty", "xphi")
        init_mode = "at"
    else:
        init_mode = "input"
    with_z0 = init_mode == "input"

    x2 = x.reshape(B, 1, HW).astype(jnp.float32)
    ps2 = Phi_sum.reshape(B, 1, HW).astype(jnp.float32)
    phi2 = Phi.reshape(B, F, HW).astype(jnp.float32)
    if Fp != F:
        phi2 = jnp.pad(phi2, ((0, 0), (0, Fp - F), (0, 0)))   # zero mask rows stay zero
    operands = [x2, phi2, ps2]
    if with_z0:
        z0 = initial_point.reshape(B, F, HW).astype(jnp.float32)
        if Fp != F:
            z0 = jnp.pad(z0, ((0, 0), (0, Fp - F), (0, 0)))
        operands.append(z0)

    # Chip-aware tile budget / VMEM limit (v5e/v6e 128 MiB, v7x 64 MiB).
    cap = _vmem_capacity_bytes()
    budget = min(int(cap * 0.8), cap - (8 << 20))
    if spatial_tile is None:
        T = _pick_spatial_tile(HW, Fp, with_z0, budget)
        T = _split_for_min_programs(T, HW, B)
    else:
        T = spatial_tile
        assert T % 128 == 0 and HW % T == 0
    n_tiles = HW // T

    est = _vmem_bytes_estimate(Fp, T, with_z0)
    vmem_limit = int(max(min(est + (4 << 20), cap - (8 << 20)), 16 << 20))

    # Accurate cost hint: long-running (MAX_ITER+1 passes) but memory-light.
    flops = int((MAX_ITER + 1) * 7 * B * Fp * HW)
    bytes_accessed = int(4 * ((2 + (1 if with_z0 else 0)) * B * Fp * HW + 4 * B * HW))
    cost = pl.CostEstimate(flops=flops, transcendentals=0,
                           bytes_accessed=bytes_accessed)

    cube_spec = pl.BlockSpec((1, Fp, T), lambda b, t: (b, 0, t))
    row_spec = pl.BlockSpec((1, 1, T), lambda b, t: (b, 0, t))
    in_specs = [row_spec, cube_spec, row_spec]
    if with_z0:
        in_specs.append(cube_spec)
    # TODO(synk): if Fp*T ever becomes VMEM-limited on v7x, switch the cube specs to
    # pipeline_mode=pl.Buffered(1) (compute:DMA ~21:1, so losing overlap costs <~5%).

    z_out, dsq, nsq = pl.pallas_call(
        _make_kernel(init_mode),
        out_shape=(jax.ShapeDtypeStruct((B, Fp, HW), jnp.float32),
                   jax.ShapeDtypeStruct((B, 1, HW), jnp.float32),
                   jax.ShapeDtypeStruct((B, 1, HW), jnp.float32)),
        grid_spec=pltpu.PrefetchScalarGridSpec(
            num_scalar_prefetch=0,
            grid=(B, n_tiles),
            in_specs=in_specs,
            out_specs=[cube_spec, row_spec, row_spec],
        ),
        compiler_params=pltpu.CompilerParams(
            dimension_semantics=("parallel", "parallel"),
            vmem_limit_bytes=vmem_limit,
        ),
        cost_estimate=cost,
    )(*operands)

    # Finish the residual outside the kernel: ||f(z*)-z*|| / (1e-5 + ||f(z*)||) per batch.
    num = jnp.sqrt(jnp.sum(dsq, axis=(1, 2)))
    den = _EPS + jnp.sqrt(jnp.sum(nsq, axis=(1, 2)))
    forward_res = num / den

    z = z_out[:, :F, :].reshape(B, F, H, W)
    return z, forward_res


# ---------------------------------------------------------------------------
# Pure-JAX reference (same forward semantics) for the sanity check
# ---------------------------------------------------------------------------
def _reference(x, Phi, Phi_sum, init):
    def f(z):
        yb = jnp.sum(Phi * z, axis=1, keepdims=True)
        corr = (x[:, None] - yb) / (Phi_sum[:, None] + GAMMA)
        z1 = z + Phi * corr
        return jnp.sign(z1) * jnp.maximum(jnp.abs(z1) - LAM, 0.0)
    z = init
    for _ in range(MAX_ITER):
        z = f(z)
    return f(z)


if __name__ == "__main__":
    key = jax.random.PRNGKey(0)
    B, F, H, W = 2, 4, 16, 16
    k1, k2 = jax.random.split(key)

    # binary SCI mask, ground-truth frames, synthetic measurement
    Phi = jax.random.bernoulli(k1, 0.5, (B, F, H, W)).astype(jnp.float32)
    z_true = jax.random.normal(k2, (B, F, H, W), jnp.float32)
    x = jnp.sum(Phi * z_true, axis=1)                  # y = A(z_true): (B,H,W)
    Phi_sum = jnp.sum(Phi * Phi, axis=1)               # (B,H,W)

    # initial_point="At" -> At(y,Phi) = x*Phi computed in-kernel (no z0 DMA);
    # spatial_tile=128 exercises the 2-D (batch, tile) parallel grid at toy sizes.
    z, forward_res = deq_fixed_point(x, Phi, Phi_sum, initial_point="At",
                                     spatial_tile=128)
    z = jax.block_until_ready(z)
    forward_res = jax.block_until_ready(forward_res)

    z_ref = _reference(x, Phi, Phi_sum, x[:, None] * Phi)
    assert z.shape == (B, F, H, W)
    assert forward_res.shape == (B,)
    assert bool(jnp.all(jnp.isfinite(forward_res)))
    # Tolerance covers the hoisted reciprocal-multiply vs per-iteration divide.
    assert jnp.allclose(z, z_ref, atol=5e-5, rtol=5e-5)

    # TODO(synk): backward_hook (implicit-function gradient via autograd.grad) has no
    # forward-pass / Pallas equivalent and is not implemented.
    print("KERNEL_OK")
</pallas_src>

<mosaic_0001>
module attributes {stable_mosaic.version = 11 : i64} {
  func.func @kernel(%arg0: i32, %arg1: i32, %arg2: memref<1x1x128xf32, #tpu.memory_space<vmem>>, %arg3: memref<1x8x128xf32, #tpu.memory_space<vmem>>, %arg4: memref<1x1x128xf32, #tpu.memory_space<vmem>>, %arg5: memref<1x8x128xf32, #tpu.memory_space<vmem>>, %arg6: memref<1x1x128xf32, #tpu.memory_space<vmem>>, %arg7: memref<1x1x128xf32, #tpu.memory_space<vmem>>) attributes {dimension_semantics = [#tpu.dimension_semantics<parallel>, #tpu.dimension_semantics<parallel>], iteration_bounds = array<i64: 2, 2>, scalar_prefetch = 0 : i64, scratch_operands = 0 : i64, tpu.core_type = #tpu.core_type<tc>, window_params = [{transform_indices = @transform_0, window_bounds = array<i64: 1, 1, 128>}, {transform_indices = @transform_1, window_bounds = array<i64: 1, 8, 128>}, {transform_indices = @transform_2, window_bounds = array<i64: 1, 1, 128>}, {transform_indices = @transform_3, window_bounds = array<i64: 1, 8, 128>}, {transform_indices = @transform_4, window_bounds = array<i64: 1, 1, 128>}, {transform_indices = @transform_5, window_bounds = array<i64: 1, 1, 128>}]} {
    %c0 = arith.constant 0 : index
    %c0_0 = arith.constant 0 : index
    %c0_1 = arith.constant 0 : index
    %0 = vector.load %arg2[%c0, %c0_0, %c0_1] : memref<1x1x128xf32, #tpu.memory_space<vmem>>, vector<1x1x128xf32>
    %c0_2 = arith.constant 0 : index
    %c0_3 = arith.constant 0 : index
    %c0_4 = arith.constant 0 : index
    %1 = vector.load %arg3[%c0_2, %c0_3, %c0_4] : memref<1x8x128xf32, #tpu.memory_space<vmem>>, vector<1x8x128xf32>
    %c0_5 = arith.constant 0 : index
    %c0_6 = arith.constant 0 : index
    %c0_7 = arith.constant 0 : index
    %2 = vector.load %arg4[%c0_5, %c0_6, %c0_7] : memref<1x1x128xf32, #tpu.memory_space<vmem>>, vector<1x1x128xf32>
    %cst = arith.constant 0.00999999977 : f32
    %3 = vector.broadcast %cst : f32 to vector<1x1x128xf32>
    %4 = arith.addf %2, %3 : vector<1x1x128xf32>
    %cst_8 = arith.constant 1.000000e+00 : f32
    %5 = vector.broadcast %cst_8 : f32 to vector<1x1x128xf32>
    %6 = arith.divf %5, %4 : vector<1x1x128xf32>
    %7 = vector.broadcast %0 : vector<1x1x128xf32> to vector<1x8x128xf32>
    %8 = arith.mulf %7, %1 : vector<1x8x128xf32>
    %c0_i32 = arith.constant 0 : i32
    %9 = arith.mulf %1, %8 : vector<1x8x128xf32>
    %cst_9 = arith.constant dense<0.000000e+00> : vector<1x128xf32>
    %10 = vector.multi_reduction <add>, %9, %cst_9 [1] : vector<1x8x128xf32> to vector<1x128xf32>
    %11 = vector.shape_cast %10 : vector<1x128xf32> to vector<1x1x128xf32>
    %12 = arith.subf %0, %11 : vector<1x1x128xf32>
    %13 = arith.mulf %12, %6 : vector<1x1x128xf32>
    %14 = vector.broadcast %13 : vector<1x1x128xf32> to vector<1x8x128xf32>
    %15 = arith.mulf %1, %14 : vector<1x8x128xf32>
    %16 = arith.addf %8, %15 : vector<1x8x128xf32>
    %cst_10 = arith.constant -1.000000e-03 : f32
    %cst_11 = arith.constant 1.000000e-03 : f32
    %17 = vector.broadcast %cst_10 : f32 to vector<1x8x128xf32>
    %18 = arith.maximumf %17, %16 : vector<1x8x128xf32>
    %19 = vector.broadcast %cst_11 : f32 to vector<1x8x128xf32>
    %20 = arith.minimumf %19, %18 : vector<1x8x128xf32>
    %21 = arith.subf %16, %20 : vector<1x8x128xf32>
    %c1_i32 = arith.constant 1 : i32
    %22 = arith.mulf %1, %21 : vector<1x8x128xf32>
    %cst_12 = arith.constant dense<0.000000e+00> : vector<1x128xf32>
    %23 = vector.multi_reduction <add>, %22, %cst_12 [1] : vector<1x8x128xf32> to vector<1x128xf32>
    %24 = vector.shape_cast %23 : vector<1x128xf32> to vector<1x1x128xf32>
    %25 = arith.subf %0, %24 : vector<1x1x128xf32>
    %26 = arith.mulf %25, %6 : vector<1x1x128xf32>
    %27 = vector.broadcast %26 : vector<1x1x128xf32> to vector<1x8x128xf32>
    %28 = arith.mulf %1, %27 : vector<1x8x128xf32>
    %29 = arith.addf %21, %28 : vector<1x8x128xf32>
    %cst_13 = arith.constant -1.000000e-03 : f32
    %cst_14 = arith.constant 1.000000e-03 : f32
    %30 = vector.broadcast %cst_13 : f32 to vector<1x8x128xf32>
    %31 = arith.maximumf %30, %29 : vector<1x8x128xf32>
    %32 = vector.broadcast %cst_14 : f32 to vector<1x8x128xf32>
    %33 = arith.minimumf %32, %31 : vector<1x8x128xf32>
    %34 = arith.subf %29, %33 : vector<1x8x128xf32>
    %c2_i32 = arith.constant 2 : i32
    %35 = arith.mulf %1, %34 : vector<1x8x128xf32>
    %cst_15 = arith.constant dense<0.000000e+00> : vector<1x128xf32>
    %36 = vector.multi_reduction <add>, %35, %cst_15 [1] : vector<1x8x128xf32> to vector<1x128xf32>
    %37 = vector.shape_cast %36 : vector<1x128xf32> to vector<1x1x128xf32>
    %38 = arith.subf %0, %37 : vector<1x1x128xf32>
    %39 = arith.mulf %38, %6 : vector<1x1x128xf32>
    %40 = vector.broadcast %39 : vector<1x1x128xf32> to vector<1x8x128xf32>
    %41 = arith.mulf %1, %40 : vector<1x8x128xf32>
    %42 = arith.addf %34, %41 : vector<1x8x128xf32>
    %cst_16 = arith.constant -1.000000e-03 : f32
    %cst_17 = arith.constant 1.000000e-03 : f32
    %43 = vector.broadcast %cst_16 : f32 to vector<1x8x128xf32>
    %44 = arith.maximumf %43, %42 : vector<1x8x128xf32>
    %45 = vector.broadcast %cst_17 : f32 to vector<1x8x128xf32>
    %46 = arith.minimumf %45, %44 : vector<1x8x128xf32>
    %47 = arith.subf %42, %46 : vector<1x8x128xf32>
    %c3_i32 = arith.constant 3 : i32
    %48 = arith.mulf %1, %47 : vector<1x8x128xf32>
    %cst_18 = arith.constant dense<0.000000e+00> : vector<1x128xf32>
    %49 = vector.multi_reduction <add>, %48, %cst_18 [1] : vector<1x8x128xf32> to vector<1x128xf32>
    %50 = vector.shape_cast %49 : vector<1x128xf32> to vector<1x1x128xf32>
    %51 = arith.subf %0, %50 : vector<1x1x128xf32>
    %52 = arith.mulf %51, %6 : vector<1x1x128xf32>
    %53 = vector.broadcast %52 : vector<1x1x128xf32> to vector<1x8x128xf32>
    %54 = arith.mulf %1, %53 : vector<1x8x128xf32>
    %55 = arith.addf %47, %54 : vector<1x8x128xf32>
    %cst_19 = arith.constant -1.000000e-03 : f32
    %cst_20 = arith.constant 1.000000e-03 : f32
    %56 = vector.broadcast %cst_19 : f32 to vector<1x8x128xf32>
    %57 = arith.maximumf %56, %55 : vector<1x8x128xf32>
    %58 = vector.broadcast %cst_20 : f32 to vector<1x8x128xf32>
    %59 = arith.minimumf %58, %57 : vector<1x8x128xf32>
    %60 = arith.subf %55, %59 : vector<1x8x128xf32>
    %c4_i32 = arith.constant 4 : i32
    %61 = arith.mulf %1, %60 : vector<1x8x128xf32>
    %cst_21 = arith.constant dense<0.000000e+00> : vector<1x128xf32>
    %62 = vector.multi_reduction <add>, %61, %cst_21 [1] : vector<1x8x128xf32> to vector<1x128xf32>
    %63 = vector.shape_cast %62 : vector<1x128xf32> to vector<1x1x128xf32>
    %64 = arith.subf %0, %63 : vector<1x1x128xf32>
    %65 = arith.mulf %64, %6 : vector<1x1x128xf32>
    %66 = vector.broadcast %65 : vector<1x1x128xf32> to vector<1x8x128xf32>
    %67 = arith.mulf %1, %66 : vector<1x8x128xf32>
    %68 = arith.addf %60, %67 : vector<1x8x128xf32>
    %cst_22 = arith.constant -1.000000e-03 : f32
    %cst_23 = arith.constant 1.000000e-03 : f32
    %69 = vector.broadcast %cst_22 : f32 to vector<1x8x128xf32>
    %70 = arith.maximumf %69, %68 : vector<1x8x128xf32>
    %71 = vector.broadcast %cst_23 : f32 to vector<1x8x128xf32>
    %72 = arith.minimumf %71, %70 : vector<1x8x128xf32>
    %73 = arith.subf %68, %72 : vector<1x8x128xf32>
    %c5_i32 = arith.constant 5 : i32
    %74 = arith.mulf %1, %73 : vector<1x8x128xf32>
    %cst_24 = arith.constant dense<0.000000e+00> : vector<1x128xf32>
    %75 = vector.multi_reduction <add>, %74, %cst_24 [1] : vector<1x8x128xf32> to vector<1x128xf32>
    %76 = vector.shape_cast %75 : vector<1x128xf32> to vector<1x1x128xf32>
    %77 = arith.subf %0, %76 : vector<1x1x128xf32>
    %78 = arith.mulf %77, %6 : vector<1x1x128xf32>
    %79 = vector.broadcast %78 : vector<1x1x128xf32> to vector<1x8x128xf32>
    %80 = arith.mulf %1, %79 : vector<1x8x128xf32>
    %81 = arith.addf %73, %80 : vector<1x8x128xf32>
    %cst_25 = arith.constant -1.000000e-03 : f32
    %cst_26 = arith.constant 1.000000e-03 : f32
    %82 = vector.broadcast %cst_25 : f32 to vector<1x8x128xf32>
    %83 = arith.maximumf %82, %81 : vector<1x8x128xf32>
    %84 = vector.broadcast %cst_26 : f32 to vector<1x8x128xf32>
    %85 = arith.minimumf %84, %83 : vector<1x8x128xf32>
    %86 = arith.subf %81, %85 : vector<1x8x128xf32>
    %c6_i32 = arith.constant 6 : i32
    %87 = arith.mulf %1, %86 : vector<1x8x128xf32>
    %cst_27 = arith.constant dense<0.000000e+00> : vector<1x128xf32>
    %88 = vector.multi_reduction <add>, %87, %cst_27 [1] : vector<1x8x128xf32> to vector<1x128xf32>
    %89 = vector.shape_cast %88 : vector<1x128xf32> to vector<1x1x128xf32>
    %90 = arith.subf %0, %89 : vector<1x1x128xf32>
    %91 = arith.mulf %90, %6 : vector<1x1x128xf32>
    %92 = vector.broadcast %91 : vector<1x1x128xf32> to vector<1x8x128xf32>
    %93 = arith.mulf %1, %92 : vector<1x8x128xf32>
    %94 = arith.addf %86, %93 : vector<1x8x128xf32>
    %cst_28 = arith.constant -1.000000e-03 : f32
    %cst_29 = arith.constant 1.000000e-03 : f32
    %95 = vector.broadcast %cst_28 : f32 to vector<1x8x128xf32>
    %96 = arith.maximumf %95, %94 : vector<1x8x128xf32>
    %97 = vector.broadcast %cst_29 : f32 to vector<1x8x128xf32>
    %98 = arith.minimumf %97, %96 : vector<1x8x128xf32>
    %99 = arith.subf %94, %98 : vector<1x8x128xf32>
    %c7_i32 = arith.constant 7 : i32
    %100 = arith.mulf %1, %99 : vector<1x8x128xf32>
    %cst_30 = arith.constant dense<0.000000e+00> : vector<1x128xf32>
    %101 = vector.multi_reduction <add>, %100, %cst_30 [1] : vector<1x8x128xf32> to vector<1x128xf32>
    %102 = vector.shape_cast %101 : vector<1x128xf32> to vector<1x1x128xf32>
    %103 = arith.subf %0, %102 : vector<1x1x128xf32>
    %104 = arith.mulf %103, %6 : vector<1x1x128xf32>
    %105 = vector.broadcast %104 : vector<1x1x128xf32> to vector<1x8x128xf32>
    %106 = arith.mulf %1, %105 : vector<1x8x128xf32>
    %107 = arith.addf %99, %106 : vector<1x8x128xf32>
    %cst_31 = arith.constant -1.000000e-03 : f32
    %cst_32 = arith.constant 1.000000e-03 : f32
    %108 = vector.broadcast %cst_31 : f32 to vector<1x8x128xf32>
    %109 = arith.maximumf %108, %107 : vector<1x8x128xf32>
    %110 = vector.broadcast %cst_32 : f32 to vector<1x8x128xf32>
    %111 = arith.minimumf %110, %109 : vector<1x8x128xf32>
    %112 = arith.subf %107, %111 : vector<1x8x128xf32>
    %c8_i32 = arith.constant 8 : i32
    %113 = arith.mulf %1, %112 : vector<1x8x128xf32>
    %cst_33 = arith.constant dense<0.000000e+00> : vector<1x128xf32>
    %114 = vector.multi_reduction <add>, %113, %cst_33 [1] : vector<1x8x128xf32> to vector<1x128xf32>
    %115 = vector.shape_cast %114 : vector<1x128xf32> to vector<1x1x128xf32>
    %116 = arith.subf %0, %115 : vector<1x1x128xf32>
    %117 = arith.mulf %116, %6 : vector<1x1x128xf32>
    %118 = vector.broadcast %117 : vector<1x1x128xf32> to vector<1x8x128xf32>
    %119 = arith.mulf %1, %118 : vector<1x8x128xf32>
    %120 = arith.addf %112, %119 : vector<1x8x128xf32>
    %cst_34 = arith.constant -1.000000e-03 : f32
    %cst_35 = arith.constant 1.000000e-03 : f32
    %121 = vector.broadcast %cst_34 : f32 to vector<1x8x128xf32>
    %122 = arith.maximumf %121, %120 : vector<1x8x128xf32>
    %123 = vector.broadcast %cst_35 : f32 to vector<1x8x128xf32>
    %124 = arith.minimumf %123, %122 : vector<1x8x128xf32>
    %125 = arith.subf %120, %124 : vector<1x8x128xf32>
    %c9_i32 = arith.constant 9 : i32
    %126 = arith.mulf %1, %125 : vector<1x8x128xf32>
    %cst_36 = arith.constant dense<0.000000e+00> : vector<1x128xf32>
    %127 = vector.multi_reduction <add>, %126, %cst_36 [1] : vector<1x8x128xf32> to vector<1x128xf32>
    %128 = vector.shape_cast %127 : vector<1x128xf32> to vector<1x1x128xf32>
    %129 = arith.subf %0, %128 : vector<1x1x128xf32>
    %130 = arith.mulf %129, %6 : vector<1x1x128xf32>
    %131 = vector.broadcast %130 : vector<1x1x128xf32> to vector<1x8x128xf32>
    %132 = arith.mulf %1, %131 : vector<1x8x128xf32>
    %133 = arith.addf %125, %132 : vector<1x8x128xf32>
    %cst_37 = arith.constant -1.000000e-03 : f32
    %cst_38 = arith.constant 1.000000e-03 : f32
    %134 = vector.broadcast %cst_37 : f32 to vector<1x8x128xf32>
    %135 = arith.maximumf %134, %133 : vector<1x8x128xf32>
    %136 = vector.broadcast %cst_38 : f32 to vector<1x8x128xf32>
    %137 = arith.minimumf %136, %135 : vector<1x8x128xf32>
    %138 = arith.subf %133, %137 : vector<1x8x128xf32>
    %c10_i32 = arith.constant 10 : i32
    %139 = arith.mulf %1, %138 : vector<1x8x128xf32>
    %cst_39 = arith.constant dense<0.000000e+00> : vector<1x128xf32>
    %140 = vector.multi_reduction <add>, %139, %cst_39 [1] : vector<1x8x128xf32> to vector<1x128xf32>
    %141 = vector.shape_cast %140 : vector<1x128xf32> to vector<1x1x128xf32>
    %142 = arith.subf %0, %141 : vector<1x1x128xf32>
    %143 = arith.mulf %142, %6 : vector<1x1x128xf32>
    %144 = vector.broadcast %143 : vector<1x1x128xf32> to vector<1x8x128xf32>
    %145 = arith.mulf %1, %144 : vector<1x8x128xf32>
    %146 = arith.addf %138, %145 : vector<1x8x128xf32>
    %cst_40 = arith.constant -1.000000e-03 : f32
    %cst_41 = arith.constant 1.000000e-03 : f32
    %147 = vector.broadcast %cst_40 : f32 to vector<1x8x128xf32>
    %148 = arith.maximumf %147, %146 : vector<1x8x128xf32>
    %149 = vector.broadcast %cst_41 : f32 to vector<1x8x128xf32>
    %150 = arith.minimumf %149, %148 : vector<1x8x128xf32>
    %151 = arith.subf %146, %150 : vector<1x8x128xf32>
    %c11_i32 = arith.constant 11 : i32
    %152 = arith.mulf %1, %151 : vector<1x8x128xf32>
    %cst_42 = arith.constant dense<0.000000e+00> : vector<1x128xf32>
    %153 = vector.multi_reduction <add>, %152, %cst_42 [1] : vector<1x8x128xf32> to vector<1x128xf32>
    %154 = vector.shape_cast %153 : vector<1x128xf32> to vector<1x1x128xf32>
    %155 = arith.subf %0, %154 : vector<1x1x128xf32>
    %156 = arith.mulf %155, %6 : vector<1x1x128xf32>
    %157 = vector.broadcast %156 : vector<1x1x128xf32> to vector<1x8x128xf32>
    %158 = arith.mulf %1, %157 : vector<1x8x128xf32>
    %159 = arith.addf %151, %158 : vector<1x8x128xf32>
    %cst_43 = arith.constant -1.000000e-03 : f32
    %cst_44 = arith.constant 1.000000e-03 : f32
    %160 = vector.broadcast %cst_43 : f32 to vector<1x8x128xf32>
    %161 = arith.maximumf %160, %159 : vector<1x8x128xf32>
    %162 = vector.broadcast %cst_44 : f32 to vector<1x8x128xf32>
    %163 = arith.minimumf %162, %161 : vector<1x8x128xf32>
    %164 = arith.subf %159, %163 : vector<1x8x128xf32>
    %c12_i32 = arith.constant 12 : i32
    %165 = arith.mulf %1, %164 : vector<1x8x128xf32>
    %cst_45 = arith.constant dense<0.000000e+00> : vector<1x128xf32>
    %166 = vector.multi_reduction <add>, %165, %cst_45 [1] : vector<1x8x128xf32> to vector<1x128xf32>
    %167 = vector.shape_cast %166 : vector<1x128xf32> to vector<1x1x128xf32>
    %168 = arith.subf %0, %167 : vector<1x1x128xf32>
    %169 = arith.mulf %168, %6 : vector<1x1x128xf32>
    %170 = vector.broadcast %169 : vector<1x1x128xf32> to vector<1x8x128xf32>
    %171 = arith.mulf %1, %170 : vector<1x8x128xf32>
    %172 = arith.addf %164, %171 : vector<1x8x128xf32>
    %cst_46 = arith.constant -1.000000e-03 : f32
    %cst_47 = arith.constant 1.000000e-03 : f32
    %173 = vector.broadcast %cst_46 : f32 to vector<1x8x128xf32>
    %174 = arith.maximumf %173, %172 : vector<1x8x128xf32>
    %175 = vector.broadcast %cst_47 : f32 to vector<1x8x128xf32>
    %176 = arith.minimumf %175, %174 : vector<1x8x128xf32>
    %177 = arith.subf %172, %176 : vector<1x8x128xf32>
    %c13_i32 = arith.constant 13 : i32
    %178 = arith.mulf %1, %177 : vector<1x8x128xf32>
    %cst_48 = arith.constant dense<0.000000e+00> : vector<1x128xf32>
    %179 = vector.multi_reduction <add>, %178, %cst_48 [1] : vector<1x8x128xf32> to vector<1x128xf32>
    %180 = vector.shape_cast %179 : vector<1x128xf32> to vector<1x1x128xf32>
    %181 = arith.subf %0, %180 : vector<1x1x128xf32>
    %182 = arith.mulf %181, %6 : vector<1x1x128xf32>
    %183 = vector.broadcast %182 : vector<1x1x128xf32> to vector<1x8x128xf32>
    %184 = arith.mulf %1, %183 : vector<1x8x128xf32>
    %185 = arith.addf %177, %184 : vector<1x8x128xf32>
    %cst_49 = arith.constant -1.000000e-03 : f32
    %cst_50 = arith.constant 1.000000e-03 : f32
    %186 = vector.broadcast %cst_49 : f32 to vector<1x8x128xf32>
    %187 = arith.maximumf %186, %185 : vector<1x8x128xf32>
    %188 = vector.broadcast %cst_50 : f32 to vector<1x8x128xf32>
    %189 = arith.minimumf %188, %187 : vector<1x8x128xf32>
    %190 = arith.subf %185, %189 : vector<1x8x128xf32>
    %c14_i32 = arith.constant 14 : i32
    %191 = arith.mulf %1, %190 : vector<1x8x128xf32>
    %cst_51 = arith.constant dense<0.000000e+00> : vector<1x128xf32>
    %192 = vector.multi_reduction <add>, %191, %cst_51 [1] : vector<1x8x128xf32> to vector<1x128xf32>
    %193 = vector.shape_cast %192 : vector<1x128xf32> to vector<1x1x128xf32>
    %194 = arith.subf %0, %193 : vector<1x1x128xf32>
    %195 = arith.mulf %194, %6 : vector<1x1x128xf32>
    %196 = vector.broadcast %195 : vector<1x1x128xf32> to vector<1x8x128xf32>
    %197 = arith.mulf %1, %196 : vector<1x8x128xf32>
    %198 = arith.addf %190, %197 : vector<1x8x128xf32>
    %cst_52 = arith.constant -1.000000e-03 : f32
    %cst_53 = arith.constant 1.000000e-03 : f32
    %199 = vector.broadcast %cst_52 : f32 to vector<1x8x128xf32>
    %200 = arith.maximumf %199, %198 : vector<1x8x128xf32>
    %201 = vector.broadcast %cst_53 : f32 to vector<1x8x128xf32>
    %202 = arith.minimumf %201, %200 : vector<1x8x128xf32>
    %203 = arith.subf %198, %202 : vector<1x8x128xf32>
    %c15_i32 = arith.constant 15 : i32
    %204 = arith.mulf %1, %203 : vector<1x8x128xf32>
    %cst_54 = arith.constant dense<0.000000e+00> : vector<1x128xf32>
    %205 = vector.multi_reduction <add>, %204, %cst_54 [1] : vector<1x8x128xf32> to vector<1x128xf32>
    %206 = vector.shape_cast %205 : vector<1x128xf32> to vector<1x1x128xf32>
    %207 = arith.subf %0, %206 : vector<1x1x128xf32>
    %208 = arith.mulf %207, %6 : vector<1x1x128xf32>
    %209 = vector.broadcast %208 : vector<1x1x128xf32> to vector<1x8x128xf32>
    %210 = arith.mulf %1, %209 : vector<1x8x128xf32>
    %211 = arith.addf %203, %210 : vector<1x8x128xf32>
    %cst_55 = arith.constant -1.000000e-03 : f32
    %cst_56 = arith.constant 1.000000e-03 : f32
    %212 = vector.broadcast %cst_55 : f32 to vector<1x8x128xf32>
    %213 = arith.maximumf %212, %211 : vector<1x8x128xf32>
    %214 = vector.broadcast %cst_56 : f32 to vector<1x8x128xf32>
    %215 = arith.minimumf %214, %213 : vector<1x8x128xf32>
    %216 = arith.subf %211, %215 : vector<1x8x128xf32>
    %c16_i32 = arith.constant 16 : i32
    %217 = arith.mulf %1, %216 : vector<1x8x128xf32>
    %cst_57 = arith.constant dense<0.000000e+00> : vector<1x128xf32>
    %218 = vector.multi_reduction <add>, %217, %cst_57 [1] : vector<1x8x128xf32> to vector<1x128xf32>
    %219 = vector.shape_cast %218 : vector<1x128xf32> to vector<1x1x128xf32>
    %220 = arith.subf %0, %219 : vector<1x1x128xf32>
    %221 = arith.mulf %220, %6 : vector<1x1x128xf32>
    %222 = vector.broadcast %221 : vector<1x1x128xf32> to vector<1x8x128xf32>
    %223 = arith.mulf %1, %222 : vector<1x8x128xf32>
    %224 = arith.addf %216, %223 : vector<1x8x128xf32>
    %cst_58 = arith.constant -1.000000e-03 : f32
    %cst_59 = arith.constant 1.000000e-03 : f32
    %225 = vector.broadcast %cst_58 : f32 to vector<1x8x128xf32>
    %226 = arith.maximumf %225, %224 : vector<1x8x128xf32>
    %227 = vector.broadcast %cst_59 : f32 to vector<1x8x128xf32>
    %228 = arith.minimumf %227, %226 : vector<1x8x128xf32>
    %229 = arith.subf %224, %228 : vector<1x8x128xf32>
    %c17_i32 = arith.constant 17 : i32
    %230 = arith.mulf %1, %229 : vector<1x8x128xf32>
    %cst_60 = arith.constant dense<0.000000e+00> : vector<1x128xf32>
    %231 = vector.multi_reduction <add>, %230, %cst_60 [1] : vector<1x8x128xf32> to vector<1x128xf32>
    %232 = vector.shape_cast %231 : vector<1x128xf32> to vector<1x1x128xf32>
    %233 = arith.subf %0, %232 : vector<1x1x128xf32>
    %234 = arith.mulf %233, %6 : vector<1x1x128xf32>
    %235 = vector.broadcast %234 : vector<1x1x128xf32> to vector<1x8x128xf32>
    %236 = arith.mulf %1, %235 : vector<1x8x128xf32>
    %237 = arith.addf %229, %236 : vector<1x8x128xf32>
    %cst_61 = arith.constant -1.000000e-03 : f32
    %cst_62 = arith.constant 1.000000e-03 : f32
    %238 = vector.broadcast %cst_61 : f32 to vector<1x8x128xf32>
    %239 = arith.maximumf %238, %237 : vector<1x8x128xf32>
    %240 = vector.broadcast %cst_62 : f32 to vector<1x8x128xf32>
    %241 = arith.minimumf %240, %239 : vector<1x8x128xf32>
    %242 = arith.subf %237, %241 : vector<1x8x128xf32>
    %c18_i32 = arith.constant 18 : i32
    %243 = arith.mulf %1, %242 : vector<1x8x128xf32>
    %cst_63 = arith.constant dense<0.000000e+00> : vector<1x128xf32>
    %244 = vector.multi_reduction <add>, %243, %cst_63 [1] : vector<1x8x128xf32> to vector<1x128xf32>
    %245 = vector.shape_cast %244 : vector<1x128xf32> to vector<1x1x128xf32>
    %246 = arith.subf %0, %245 : vector<1x1x128xf32>
    %247 = arith.mulf %246, %6 : vector<1x1x128xf32>
    %248 = vector.broadcast %247 : vector<1x1x128xf32> to vector<1x8x128xf32>
    %249 = arith.mulf %1, %248 : vector<1x8x128xf32>
    %250 = arith.addf %242, %249 : vector<1x8x128xf32>
    %cst_64 = arith.constant -1.000000e-03 : f32
    %cst_65 = arith.constant 1.000000e-03 : f32
    %251 = vector.broadcast %cst_64 : f32 to vector<1x8x128xf32>
    %252 = arith.maximumf %251, %250 : vector<1x8x128xf32>
    %253 = vector.broadcast %cst_65 : f32 to vector<1x8x128xf32>
    %254 = arith.minimumf %253, %252 : vector<1x8x128xf32>
    %255 = arith.subf %250, %254 : vector<1x8x128xf32>
    %c19_i32 = arith.constant 19 : i32
    %256 = arith.mulf %1, %255 : vector<1x8x128xf32>
    %cst_66 = arith.constant dense<0.000000e+00> : vector<1x128xf32>
    %257 = vector.multi_reduction <add>, %256, %cst_66 [1] : vector<1x8x128xf32> to vector<1x128xf32>
    %258 = vector.shape_cast %257 : vector<1x128xf32> to vector<1x1x128xf32>
    %259 = arith.subf %0, %258 : vector<1x1x128xf32>
    %260 = arith.mulf %259, %6 : vector<1x1x128xf32>
    %261 = vector.broadcast %260 : vector<1x1x128xf32> to vector<1x8x128xf32>
    %262 = arith.mulf %1, %261 : vector<1x8x128xf32>
    %263 = arith.addf %255, %262 : vector<1x8x128xf32>
    %cst_67 = arith.constant -1.000000e-03 : f32
    %cst_68 = arith.constant 1.000000e-03 : f32
    %264 = vector.broadcast %cst_67 : f32 to vector<1x8x128xf32>
    %265 = arith.maximumf %264, %263 : vector<1x8x128xf32>
    %266 = vector.broadcast %cst_68 : f32 to vector<1x8x128xf32>
    %267 = arith.minimumf %266, %265 : vector<1x8x128xf32>
    %268 = arith.subf %263, %267 : vector<1x8x128xf32>
    %269 = arith.mulf %1, %268 : vector<1x8x128xf32>
    %cst_69 = arith.constant dense<0.000000e+00> : vector<1x128xf32>
    %270 = vector.multi_reduction <add>, %269, %cst_69 [1] : vector<1x8x128xf32> to vector<1x128xf32>
    %271 = vector.shape_cast %270 : vector<1x128xf32> to vector<1x1x128xf32>
    %272 = arith.subf %0, %271 : vector<1x1x128xf32>
    %273 = arith.mulf %272, %6 : vector<1x1x128xf32>
    %274 = vector.broadcast %273 : vector<1x1x128xf32> to vector<1x8x128xf32>
    %275 = arith.mulf %1, %274 : vector<1x8x128xf32>
    %276 = arith.addf %268, %275 : vector<1x8x128xf32>
    %cst_70 = arith.constant -1.000000e-03 : f32
    %cst_71 = arith.constant 1.000000e-03 : f32
    %277 = vector.broadcast %cst_70 : f32 to vector<1x8x128xf32>
    %278 = arith.maximumf %277, %276 : vector<1x8x128xf32>
    %279 = vector.broadcast %cst_71 : f32 to vector<1x8x128xf32>
    %280 = arith.minimumf %279, %278 : vector<1x8x128xf32>
    %281 = arith.subf %276, %280 : vector<1x8x128xf32>
    %c0_72 = arith.constant 0 : index
    %c0_73 = arith.constant 0 : index
    %c0_74 = arith.constant 0 : index
    %282 = vector.load %arg5[%c0_72, %c0_73, %c0_74] : memref<1x8x128xf32, #tpu.memory_space<vmem>>, vector<1x8x128xf32>
    tpu.vector_store %arg5[%c0_72, %c0_73, %c0_74], %281 {strides = array<i32>} : memref<1x8x128xf32, #tpu.memory_space<vmem>>, vector<1x8x128xf32>,
    %283 = arith.subf %281, %268 : vector<1x8x128xf32>
    %284 = arith.mulf %283, %283 : vector<1x8x128xf32>
    %cst_75 = arith.constant dense<0.000000e+00> : vector<1x128xf32>
    %285 = vector.multi_reduction <add>, %284, %cst_75 [1] : vector<1x8x128xf32> to vector<1x128xf32>
    %286 = vector.shape_cast %285 : vector<1x128xf32> to vector<1x1x128xf32>
    %c0_76 = arith.constant 0 : index
    %c0_77 = arith.constant 0 : index
    %c0_78 = arith.constant 0 : index
    %287 = vector.load %arg6[%c0_76, %c0_77, %c0_78] : memref<1x1x128xf32, #tpu.memory_space<vmem>>, vector<1x1x128xf32>
    tpu.vector_store %arg6[%c0_76, %c0_77, %c0_78], %286 {strides = array<i32>} : memref<1x1x128xf32, #tpu.memory_space<vmem>>, vector<1x1x128xf32>,
    %288 = arith.mulf %281, %281 : vector<1x8x128xf32>
    %cst_79 = arith.constant dense<0.000000e+00> : vector<1x128xf32>
    %289 = vector.multi_reduction <add>, %288, %cst_79 [1] : vector<1x8x128xf32> to vector<1x128xf32>
    %290 = vector.shape_cast %289 : vector<1x128xf32> to vector<1x1x128xf32>
    %c0_80 = arith.constant 0 : index
    %c0_81 = arith.constant 0 : index
    %c0_82 = arith.constant 0 : index
    %291 = vector.load %arg7[%c0_80, %c0_81, %c0_82] : memref<1x1x128xf32, #tpu.memory_space<vmem>>, vector<1x1x128xf32>
    tpu.vector_store %arg7[%c0_80, %c0_81, %c0_82], %290 {strides = array<i32>} : memref<1x1x128xf32, #tpu.memory_space<vmem>>, vector<1x1x128xf32>,
    return
  }
  func.func @transform_0(%arg0: i32, %arg1: i32) -> (i32, i32, i32) {
    %c0_i32 = arith.constant 0 : i32
    %c0_i32_0 = arith.constant 0 : i32
    return %arg0, %c0_i32, %arg1 : i32, i32, i32
  }
  func.func @transform_1(%arg0: i32, %arg1: i32) -> (i32, i32, i32) {
    %c0_i32 = arith.constant 0 : i32
    %c0_i32_0 = arith.constant 0 : i32
    return %arg0, %c0_i32, %arg1 : i32, i32, i32
  }
  func.func @transform_2(%arg0: i32, %arg1: i32) -> (i32, i32, i32) {
    %c0_i32 = arith.constant 0 : i32
    %c0_i32_0 = arith.constant 0 : i32
    return %arg0, %c0_i32, %arg1 : i32, i32, i32
  }
  func.func @transform_3(%arg0: i32, %arg1: i32) -> (i32, i32, i32) {
    %c0_i32 = arith.constant 0 : i32
    %c0_i32_0 = arith.constant 0 : i32
    return %arg0, %c0_i32, %arg1 : i32, i32, i32
  }
  func.func @transform_4(%arg0: i32, %arg1: i32) -> (i32, i32, i32) {
    %c0_i32 = arith.constant 0 : i32
    %c0_i32_0 = arith.constant 0 : i32
    return %arg0, %c0_i32, %arg1 : i32, i32, i32
  }
  func.func @transform_5(%arg0: i32, %arg1: i32) -> (i32, i32, i32) {
    %c0_i32 = arith.constant 0 : i32
    %c0_i32_0 = arith.constant 0 : i32
    return %arg0, %c0_i32, %arg1 : i32, i32, i32
  }
}

</mosaic_0001>

<bundles_post_ra>
// kernel: tpu_custom_call.1
= control target key start
LH: loop header
LB: loop body
LE: loop exit
PB: predicated region body
PF: predicated region fallthrough
CT: control target
= control target key end

     0   :  { %s1867_s0 = inlined_call_operand.hbm [shape: f32[2,1,256], index: 0, kind: input, shape index: {}]   ;;  %s1868_s1 = inlined_call_operand.hbm [shape: f32[2,8,256], index: 1, kind: input, shape index: {}]   ;;  %s1869_s2 = inlined_call_operand.vmem [shape: f32[2,1,256], index: 2, kind: input, shape index: {}]   ;;  %s1870_s3 = inlined_call_operand.hbm [shape: f32[2,8,256], index: 3, kind: output, shape index: {0}]   ;;  %s1871_s4 = inlined_call_operand.hbm [shape: f32[2,1,256], index: 4, kind: output, shape index: {1}]   ;;  %s1872_s5 = inlined_call_operand.hbm [shape: f32[2,1,256], index: 5, kind: output, shape index: {2}]  }
   0x1   :  { %1879 = sst [smem:[#allocation18_spill]] %s1867_s0 }
   0x2   :  { %11 = vsyncpa [#allocation3], 0 }
   0x3   :  { %13 = vsyncpa [#allocation3 + $0x1], 0 }
   0x4   :  { %14 = vsyncpa [#allocation6], 0 }
   0x5   :  { %16 = vsyncpa [#allocation6 + $0x1], 0 }
   0x6   :  { %17 = vsyncpa [#allocation4], 0 }
   0x7   :  { %19 = vsyncpa [#allocation4 + $0x1], 0 }
   0x8   :  { %20 = vsyncpa [#allocation9], 0 }
   0x9   :  { %22 = vsyncpa [#allocation9 + $0x1], 0  ;;  %s1425_s18 = smov 0   ;;  %s1427_s19 = smov 0  }
   0xa   :  { %s1429_s20 = smov 0   ;;  %s1431_s21 = smov 0  }
   0xb   :  { %s1433_s22 = smov 0   ;;  %s1435_s23 = smov 0  }
   0xc   :  { %s1437_s24 = smov 0   ;;  %s1439_s25 = smov 0  }
   0xd LB: > { %1880 = sst [smem:[#allocation15_spill]] %s1384_s24  ;;  %s1466_s26 = sadd.s32 4294967295, %s1388_s25   ;;  %s1388_s25 = sphi %s1439_s25, %s28_s25   ;;  %s1384_s24 = sphi %s1437_s24, %s1899_s24   ;;  %s1380_s23 = sphi %s1435_s23, %s1904_s23   ;;  %s1376_s22 = sphi %s1433_s22, %s1897_s22   ;;  %s1372_s21 = sphi %s1431_s21, %s1903_s21   ;;  %s1368_s20 = sphi %s1429_s20, %s1902_s20   ;;  %s1364_s19 = sphi %s1427_s19, %s1901_s19   ;;  %s1360_s18 = sphi %s1425_s18, %s1900_s18  }
   0xe   : > { %s1874_s27 = sadd.s32 4294967294, %s1388_s25   ;;  %s37_s28 = sadd.s32 1, %s1380_s23 }
   0xf   : > { %s40_s29 = sadd.s32 1, %s1384_s24  ;;  %p38_p0 = scmp.ge.s32.totalorder %s37_s28, 2 }
  0x10   : > { %s49_s30 = sadd.s32 1, %s1368_s20  ;;  %p56_p1 = scmp.ne.s32.totalorder %s1368_s20, %s1364_s19 }
  0x11   : > { %p57_p2 = scmp.eq.s32.totalorder %s1388_s25, 0  ;;  %s1906_s28 = smov (%p38_p0, %s37_s28), 0 }
  0x12   : > { %1881 = sst [smem:[#allocation16_spill]] %s1906_s28  ;;  %s1908_s29 = smov (!%p38_p0, %s40_s29), %s1384_s24 }
  0x13   : > { %s45_s6 = ssub.s32 %s1380_s23, %s1906_s28  ;;  %p1480_p3 = por %p57_p2, %p56_p1 }
  0x14   : > { %p42_p4 = scmp.ge.s32.totalorder %s1908_s29, 2  ;;  %p62_p5 = scmp.ne.s32.totalorder %s1364_s19, %s1360_s18 }
  0x15   : > { %p63_p6 = scmp.eq.s32.totalorder %s1466_s26, 0  ;;  %p144_p7 = scmp.eq.s32.totalorder %s1466_s26, 3 }
  0x16   : > { %s1910_s29 = smov (%p42_p4, %s1908_s29), 0  ;;  %p150_p10 = scmp.eq.s32.totalorder %s1874_s27, 3 }
  0x17   : > { %1883 = sst [smem:[#allocation17_spill]] %s1910_s29  ;;  %p1490_p8 = por %p63_p6, %p62_p5 }
  0x18   : > { %p1494_p9 = por %p144_p7, %p56_p1  ;;  %s44_s10 = ssub.s32 %s1384_s24, %s1910_s29 }
  0x19   : > { %s1884_s8 = scalar_select %p1490_p8, 1, 0 }
  0x1a   : > { %s1885_s9 = scalar_select %p1494_p9, 1, 0 }
  0x1b   : > { %s46_s11 = sor.u32 %s45_s6, %s44_s10  ;;  %p1502_p12 = por %p150_p10, %p62_p5 }
  0x1c   : > { %p47_p11 = scmp.eq.s32.totalorder %s46_s11, 0  ;;  %p1098_p13 = scmp.lt.s32.totalorder %s1388_s25, 4 }
  0x1d   : > { %s1886_s12 = scalar_select %p1502_p12, 1, 0 }
  0x1e   : > { %s1508_s13 = sand.u32 1, %s1368_s20   ;;  %s1032_s15 = sshll.u32 %s1384_s24, 1 }
  0x1f   : > { %s1511_s14 = scalar_select %p47_p11, %s1368_s20, %s49_s30  }
  0x20   : > { %s229_s16 = scalar_lea.vmem [#allocation2], %s1508_s13  ;;  %s1516_s29 = sadd.s32 %s1380_s23, %s1032_s15 }
  0x21   : > { %s238_s17 = sshll.u32 %s229_s16, 4  ;;  %s1033_s6 = sshll.u32 %s1516_s29, 4  ;;  %s1518_s17 = int_to_ptr.vmem [resolvable:$true] %s238_s17 }
  0x22   : > { %p1523_p0 = pnand %p1098_p13, %p1480_p3  ;;  %s1888_s0 = sld [smem:[#allocation18_spill]] }
  0x23   : > { %s227_s15 = scalar_lea.sflag [#allocation3], %s1508_s13 }
  0x24   : > { %p1168_p3 = pneg %p1523_p0 }
  0x28   : > { %s1530_s30 = scalar_lea.hbm %s1888_s0, %s1033_s6  ;;  %s1171_s6 = scalar_lea.hbm %s1888_s0, 64 }
  0x29   : > { %s1166_s16 = scalar_lea.hbm %s1530_s30, 16  ;;  %p1172_p7 = scmp.lt.u32.totalorder %s1530_s30, %s1888_s0 }
  0x2a   : > { %p1167_p4 = scmp.ne.s32.totalorder %s1530_s30, %s1166_s16  ;;  %p1173_p10 = scmp.lt.u32.totalorder %s1171_s6, %s1166_s16 }
  0x2b   : > { %p1175_p13 = scmp.lt.u32.totalorder %s1166_s16, %s1530_s30 }
  0x2c   : > { %p1169_p5 = pnand %p1168_p3, %p1167_p4  ;;  %p1174_p11 = por %p1173_p10, %p1172_p7 }
  0x2e   : > { %p1170_p6 = pneg %p1169_p5  ;;  %p1176_p1 = por %p1175_p13, %p1174_p11 }
  0x30   : > { %p1177_p2 = pnand %p1176_p1, %p1170_p6 }
  0x32   : > { %1180 = shalt.err (!%p1177_p2)
}
  0x33   : > { %s1181_s24 = scalar_lea.vmem %s1518_s17, 16  ;;  %s1390_s27 = smov [#allocation2]  }
  0x34   : > { %p1182_p4 = scmp.ne.s32.totalorder %s1518_s17, %s1181_s24  ;;  %s1186_s7 = sshll.u32 %s1390_s27, 4  ;;  %s1187_s7 = int_to_ptr.vmem [resolvable:$false] %s1186_s7 }
  0x35   : > { %s1188_s28 = scalar_lea.vmem %s1187_s7, 32  ;;  %p1189_p9 = scmp.lt.s32.totalorder %s1518_s17, %s1187_s7 }
  0x36   : > { %p1184_p5 = pnand %p1182_p4, %p1168_p3  ;;  %p1190_p7 = scmp.lt.s32.totalorder %s1188_s28, %s1181_s24 }
  0x38   : > { %p1185_p12 = pneg %p1184_p5  ;;  %p1191_p10 = por %p1190_p7, %p1189_p9 }
  0x3a   : > { %p1192_p11 = pnand %p1191_p10, %p1185_p12 }
  0x3c   : > { %1195 = shalt.err (!%p1192_p11)
}
  0x3d   : > { %1084 = dma.hbm_to_vmem [thread:$0]  (!%p1523_p0), %s1530_s30, 16, %s1518_s17, %s227_s15  }
  0x3e   : > { %p1889_p1 = scmp.lt.s32.totalorder %s1388_s25, 5  ;;  %p1890_p2 = scmp.ge.s32.totalorder %s1388_s25, 1 }
  0x3f   : > { %s1034_s24 = sshll.u32 %s1508_s13, 3  ;;  %s1036_s6 = sshll.u32 %s1516_s29, 7 }
  0x40   : > { %p1564_p6 = pnand %p1890_p2, %p1889_p1  ;;  %s1573_s7 = scalar_lea.hbm %s1868_s1, %s1036_s6 }
  0x41   : > { %s249_s28 = scalar_lea.vmem [#allocation5], %s1034_s24  ;;  %s246_s17 = scalar_lea.sflag [#allocation6], %s1508_s13 }
  0x42   : > { %s1891_s16 = scalar_select %p1564_p6, 1, 0 }
  0x43   : > { %s258_s0 = sshll.u32 %s249_s28, 4  ;;  %s1196_s30 = scalar_lea.hbm %s1573_s7, 128  ;;  %s259_s0 = int_to_ptr.vmem [resolvable:$true] %s258_s0 }
  0x44   : > { %p1197_p9 = scmp.ne.s32.totalorder %s1573_s7, %s1196_s30  ;;  %s1201_s11 = scalar_lea.hbm %s1868_s1, 512 }
  0x45   : > { %p1202_p4 = scmp.lt.u32.totalorder %s1573_s7, %s1868_s1  ;;  %p1203_p5 = scmp.lt.u32.totalorder %s1201_s11, %s1196_s30 }
  0x46   : > { %p1199_p12 = pnand %p1197_p9, %p1168_p3  ;;  %p1205_p10 = scmp.lt.u32.totalorder %s1196_s30, %s1573_s7 }
  0x47   : > { %p1204_p7 = por %p1203_p5, %p1202_p4 }
  0x48   : > { %p1200_p13 = pneg %p1199_p12 }
  0x49   : > { %p1206_p11 = por %p1205_p10, %p1204_p7 }
  0x4b   : > { %p1207_p1 = pnand %p1206_p11, %p1200_p13 }
  0x4d   : > { %1210 = shalt.err (!%p1207_p1)
}
  0x4e   : > { %s1211_s13 = scalar_lea.vmem %s259_s0, 128  ;;  %s1391_s24 = smov [#allocation5]  }
  0x4f   : > { %p1212_p2 = scmp.ne.s32.totalorder %s259_s0, %s1211_s13  ;;  %s1216_s28 = sshll.u32 %s1391_s24, 4  ;;  %s1217_s28 = int_to_ptr.vmem [resolvable:$false] %s1216_s28 }
  0x50   : > { %s1218_s29 = scalar_lea.vmem %s1217_s28, 256  ;;  %p1219_p8 = scmp.lt.s32.totalorder %s259_s0, %s1217_s28 }
  0x51   : > { %p1214_p9 = pnand %p1212_p2, %p1168_p3  ;;  %p1220_p6 = scmp.lt.s32.totalorder %s1218_s29, %s1211_s13 }
  0x53   : > { %p1215_p12 = pneg %p1214_p9  ;;  %p1221_p4 = por %p1220_p6, %p1219_p8 }
  0x55   : > { %p1222_p5 = pnand %p1221_p4, %p1215_p12 }
  0x57   : > { %1225 = shalt.err (!%p1222_p5)
}
  0x58   : > { %1087 = dma.hbm_to_vmem [thread:$0]  (!%p1523_p0), %s1573_s7, 128, %s259_s0, %s246_s17  }
  0x59   : > { %p1892_p13 = scmp.ne.s32.totalorder %s1891_s16, 0 }
  0x5a   : > { %s1598_s30 = sand.u32 (!%p1892_p13), 1, %s1364_s19   ;;  %p1893_p3 = scmp.ne.s32.totalorder (!%p1892_p13), %s1884_s8, 0 }
  0x5b   : > { %277 = sbr.rel (%p1892_p13) target bundleno = 763 (0x2fb), region = 32  ;;  %s280_s15 = scalar_lea.sflag (!%p1892_p13), [#allocation3], %s1598_s30 }
  0x5c   : > { %s282_s11 = scalar_lea.vmem (!%p1892_p13), [#allocation2], %s1598_s30 }
  0x62   : > { %1343 = dma.done.wait (%p1893_p3), %s280_s15, 16  }
  0x63   : > { %1345 = vsyncadd (%p1893_p3), %s280_s15, 4294967280  ;;  %s1038_s0 = sshll.u32 %s1598_s30, 3  ;;  %s288_s10 = scalar_lea.sflag [#allocation6], %s1598_s30 }
  0x64   : > { %s291_s16 = scalar_lea.vmem [#allocation5], %s1038_s0 }
  0x65   : > { %1347 = dma.done.wait (%p1893_p3), %s288_s10, 128  }
  0x66   : > { %1349 = vsyncadd (%p1893_p3), %s288_s10, 4294967168  ;;  %p337_p8 = scmp.lt.s32.totalorder %s1376_s22, 1  ;;  %p339_p0 = scmp.lt.s32.totalorder %s1372_s21, 1  ;;  %v351_v0 = vlaneseq  ;;  %v1623_v3 = vld [vmem:[%s282_s11] sm:$0x1]  ;;  %v1625_v4 = vld [vmem:[%s291_s16] sm:$0xff] }
  0x67   : > { %s1063_s8 = sshll.u32 %s1376_s22, 1  ;;  %s324_s15 = scalar_lea.vmem [#allocation7], %s1038_s0 }
  0x68   : > { %s338_s7 = scalar_select %p337_p8, %s1376_s22, 1  ;;  %v352_v1 = vshrl.u32 %v351_v0, 7 }
  0x69   : > { %s340_s17 = scalar_select %p339_p0, %s1372_s21, 1 }
  0x6a   : > { %s1040_s6 = sshll.u32 %s338_s7, 1  ;;  %v1618_v2 = vsub.s32 0, %v352_v1  ;;  %s1739_s29 = sadd.s32 %s1372_s21, %s1063_s8 }
  0x6b   : > { %s342_s27 = sadd.s32 %s1040_s6, %s340_s17  ;;  %s819_s11 = sshll.u32 %s324_s15, 4  ;;  %s1744_s11 = int_to_ptr.vmem [resolvable:$true] %s819_s11 }
  0x6c   : > { %s343_s28 = scalar_lea.vmem %s1869_s2, %s342_s27  ;;  %v354_v6 = vrot.slane %v1623_v3, %v1618_v2  ;;  %s1064_s10 = sshll.u32 %s1739_s29, 7 }
  0x6d   : > { %v346_v5 = vld [vmem:[%s343_s28] sm:$0x1]  ;;  %s1749_s7 = scalar_lea.hbm %s1870_s3, %s1064_s10  ;;  %s796_s21 = scalar_lea.sflag [#allocation4], %s1598_s30 }
  0x6e   : > { %v356_v7 = vmul.f32 %v354_v6, %v1625_v4  ;;  %v347_v8 = vadd.f32 0.01, %v346_v5  ;;  %s1226_s17 = scalar_lea.vmem %s1744_s11, 128  ;;  %p1894_p7 = scmp.ne.s32.totalorder %s1885_s9, 0 }
  0x6f   : > { %p1227_p6 = scmp.ne.s32.totalorder %s1744_s11, %s1226_s17  ;;  %s1392_s0 = smov [#allocation7]  }
  0x70   : > { %v357_v9 = vmul.f32 %v356_v7, %v1625_v4  ;;  %1164 = vrcp.f32 %v347_v8  ;;  %s1230_s6 = sshll.u32 %s1392_s0, 4  ;;  %s1231_s6 = int_to_ptr.vmem [resolvable:$false] %s1230_s6 }
  0x71   : > { %p1228_p10 = pnand %p1227_p6, %p1894_p7  ;;  %s1232_s27 = scalar_lea.vmem %s1231_s6, 256 }
  0x72   : > { %v358_v10 = vrot.slane %v357_v9, 4  ;;  %p1233_p1 = scmp.lt.s32.totalorder %s1744_s11, %s1231_s6  ;;  %p1234_p2 = scmp.lt.s32.totalorder %s1232_s27, %s1226_s17 }
  0x73   : > { %p1229_p11 = pneg %p1228_p10 }
  0x74   : > { %v359_v11 = vadd.f32 %v358_v10, %v357_v9  ;;  %p1235_p9 = por %p1234_p2, %p1233_p1 }
  0x76   : > { %v360_v12 = vrot.slane %v359_v11, 2  ;;  %p1236_p12 = pnand %p1235_p9, %p1229_p11 }
  0x78   : > { %v361_v13 = vadd.f32 %v360_v12, %v359_v11 }
  0x7a   : > { %v362_v14 = vrot.slane %v361_v13, 1  ;;  %v1631_v16 = vpop.eup %1164 }
  0x7c   : > { %v363_v15 = vadd.f32 %v362_v14, %v361_v13 }
  0x7e   : > { %v364_v17 = vsub.f32 %v1623_v3, %v363_v15 }
  0x80   : > { %v365_v18 = vmul.f32 %v1631_v16, %v364_v17 }
  0x82   : > { %v370_v19 = vrot.slane %v365_v18, %v1618_v2 }
  0x84   : > { %v372_v20 = vmul.f32 %v370_v19, %v1625_v4 }
  0x86   : > { %v373_v21 = vadd.f32 %v372_v20, %v356_v7 }
  0x88   : > { %v1041_v22 = vclamps-f32 %v373_v21, 0.001 }
  0x8a   : > { %v376_v23 = vsub.f32 %v373_v21, %v1041_v22 }
  0x8c   : > { %v377_v24 = vmul.f32 %v376_v23, %v1625_v4 }
  0x8e   : > { %v378_v25 = vrot.slane %v377_v24, 4 }
  0x90   : > { %v379_v26 = vadd.f32 %v378_v25, %v377_v24 }
  0x92   : > { %v380_v27 = vrot.slane %v379_v26, 2 }
  0x94   : > { %v381_v28 = vadd.f32 %v380_v27, %v379_v26 }
  0x96   : > { %v382_v29 = vrot.slane %v381_v28, 1 }
  0x98   : > { %v383_v30 = vadd.f32 %v382_v29, %v381_v28 }
  0x9a   : > { %v384_v31 = vsub.f32 %v1623_v3, %v383_v30 }
  0x9c   : > { %v385_v32 = vmul.f32 %v1631_v16, %v384_v31 }
  0x9e   : > { %v390_v33 = vrot.slane %v385_v32, %v1618_v2 }
  0xa0   : > { %v392_v34 = vmul.f32 %v390_v33, %v1625_v4 }
  0xa2   : > { %v393_v35 = vadd.f32 %v392_v34, %v376_v23 }
  0xa4   : > { %v1042_v36 = vclamps-f32 %v393_v35, 0.001 }
  0xa6   : > { %v396_v37 = vsub.f32 %v393_v35, %v1042_v36 }
  0xa8   : > { %v397_v38 = vmul.f32 %v396_v37, %v1625_v4 }
  0xaa   : > { %v398_v39 = vrot.slane %v397_v38, 4 }
  0xac   : > { %v399_v40 = vadd.f32 %v398_v39, %v397_v38 }
  0xae   : > { %v400_v41 = vrot.slane %v399_v40, 2 }
  0xb0   : > { %v401_v42 = vadd.f32 %v400_v41, %v399_v40 }
  0xb2   : > { %v402_v43 = vrot.slane %v401_v42, 1 }
  0xb4   : > { %v403_v44 = vadd.f32 %v402_v43, %v401_v42 }
  0xb6   : > { %v404_v45 = vsub.f32 %v1623_v3, %v403_v44 }
  0xb8   : > { %v405_v46 = vmul.f32 %v1631_v16, %v404_v45 }
  0xba   : > { %v410_v47 = vrot.slane %v405_v46, %v1618_v2 }
  0xbc   : > { %v412_v48 = vmul.f32 %v410_v47, %v1625_v4 }
  0xbe   : > { %v413_v49 = vadd.f32 %v412_v48, %v396_v37 }
  0xc0   : > { %v1043_v50 = vclamps-f32 %v413_v49, 0.001 }
  0xc2   : > { %v416_v51 = vsub.f32 %v413_v49, %v1043_v50 }
  0xc4   : > { %v417_v52 = vmul.f32 %v416_v51, %v1625_v4 }
  0xc6   : > { %v418_v53 = vrot.slane %v417_v52, 4 }
  0xc8   : > { %v419_v54 = vadd.f32 %v418_v53, %v417_v52 }
  0xca   : > { %v420_v55 = vrot.slane %v419_v54, 2 }
  0xcc   : > { %v421_v56 = vadd.f32 %v420_v55, %v419_v54 }
  0xce   : > { %v422_v57 = vrot.slane %v421_v56, 1 }
  0xd0   : > { %v423_v58 = vadd.f32 %v422_v57, %v421_v56 }
  0xd2   : > { %v424_v59 = vsub.f32 %v1623_v3, %v423_v58 }
  0xd4   : > { %v425_v60 = vmul.f32 %v1631_v16, %v424_v59 }
  0xd6   : > { %v430_v61 = vrot.slane %v425_v60, %v1618_v2 }
  0xd8   : > { %v432_v62 = vmul.f32 %v430_v61, %v1625_v4 }
  0xda   : > { %v433_v63 = vadd.f32 %v432_v62, %v416_v51 }
  0xdc   : > { %v1044_v0 = vclamps-f32 %v433_v63, 0.001 }
  0xde   : > { %v436_v1 = vsub.f32 %v433_v63, %v1044_v0 }
  0xe0   : > { %v437_v5 = vmul.f32 %v436_v1, %v1625_v4 }
  0xe2   : > { %v438_v6 = vrot.slane %v437_v5, 4 }
  0xe4   : > { %v439_v7 = vadd.f32 %v438_v6, %v437_v5 }
  0xe6   : > { %v440_v8 = vrot.slane %v439_v7, 2 }
  0xe8   : > { %v441_v9 = vadd.f32 %v440_v8, %v439_v7 }
  0xea   : > { %v442_v10 = vrot.slane %v441_v9, 1 }
  0xec   : > { %v443_v11 = vadd.f32 %v442_v10, %v441_v9 }
  0xee   : > { %v444_v12 = vsub.f32 %v1623_v3, %v443_v11 }
  0xf0   : > { %v445_v13 = vmul.f32 %v1631_v16, %v444_v12 }
  0xf2   : > { %v450_v14 = vrot.slane %v445_v13, %v1618_v2 }
  0xf4   : > { %v452_v15 = vmul.f32 %v450_v14, %v1625_v4 }
  0xf6   : > { %v453_v17 = vadd.f32 %v452_v15, %v436_v1 }
  0xf8   : > { %v1045_v18 = vclamps-f32 %v453_v17, 0.001 }
  0xfa   : > { %v456_v19 = vsub.f32 %v453_v17, %v1045_v18 }
  0xfc   : > { %v457_v20 = vmul.f32 %v456_v19, %v1625_v4 }
  0xfe   : > { %v458_v21 = vrot.slane %v457_v20, 4 }
 0x100   : > { %v459_v22 = vadd.f32 %v458_v21, %v457_v20 }
 0x102   : > { %v460_v23 = vrot.slane %v459_v22, 2 }
 0x104   : > { %v461_v24 = vadd.f32 %v460_v23, %v459_v22 }
 0x106   : > { %v462_v25 = vrot.slane %v461_v24, 1 }
 0x108   : > { %v463_v26 = vadd.f32 %v462_v25, %v461_v24 }
 0x10a   : > { %v464_v27 = vsub.f32 %v1623_v3, %v463_v26 }
 0x10c   : > { %v465_v28 = vmul.f32 %v1631_v16, %v464_v27 }
 0x10e   : > { %v470_v29 = vrot.slane %v465_v28, %v1618_v2 }
 0x110   : > { %v472_v30 = vmul.f32 %v470_v29, %v1625_v4 }
 0x112   : > { %v473_v31 = vadd.f32 %v472_v30, %v456_v19 }
 0x114   : > { %v1046_v32 = vclamps-f32 %v473_v31, 0.001 }
 0x116   : > { %v476_v33 = vsub.f32 %v473_v31, %v1046_v32 }
 0x118   : > { %v477_v34 = vmul.f32 %v476_v33, %v1625_v4 }
 0x11a   : > { %v478_v35 = vrot.slane %v477_v34, 4 }
 0x11c   : > { %v479_v36 = vadd.f32 %v478_v35, %v477_v34 }
 0x11e   : > { %v480_v37 = vrot.slane %v479_v36, 2 }
 0x120   : > { %v481_v38 = vadd.f32 %v480_v37, %v479_v36 }
 0x122   : > { %v482_v39 = vrot.slane %v481_v38, 1 }
 0x124   : > { %v483_v40 = vadd.f32 %v482_v39, %v481_v38 }
 0x126   : > { %v484_v41 = vsub.f32 %v1623_v3, %v483_v40 }
 0x128   : > { %v485_v42 = vmul.f32 %v1631_v16, %v484_v41 }
 0x12a   : > { %v490_v43 = vrot.slane %v485_v42, %v1618_v2 }
 0x12c   : > { %v492_v44 = vmul.f32 %v490_v43, %v1625_v4 }
 0x12e   : > { %v493_v45 = vadd.f32 %v492_v44, %v476_v33 }
 0x130   : > { %v1047_v46 = vclamps-f32 %v493_v45, 0.001 }
 0x132   : > { %v496_v47 = vsub.f32 %v493_v45, %v1047_v46 }
 0x134   : > { %v497_v48 = vmul.f32 %v496_v47, %v1625_v4 }
 0x136   : > { %v498_v49 = vrot.slane %v497_v48, 4 }
 0x138   : > { %v499_v50 = vadd.f32 %v498_v49, %v497_v48 }
 0x13a   : > { %v500_v51 = vrot.slane %v499_v50, 2 }
 0x13c   : > { %v501_v52 = vadd.f32 %v500_v51, %v499_v50 }
 0x13e   : > { %v502_v53 = vrot.slane %v501_v52, 1 }
 0x140   : > { %v503_v54 = vadd.f32 %v502_v53, %v501_v52 }
 0x142   : > { %v504_v55 = vsub.f32 %v1623_v3, %v503_v54 }
 0x144   : > { %v505_v56 = vmul.f32 %v1631_v16, %v504_v55 }
 0x146   : > { %v510_v57 = vrot.slane %v505_v56, %v1618_v2 }
 0x148   : > { %v512_v58 = vmul.f32 %v510_v57, %v1625_v4 }
 0x14a   : > { %v513_v59 = vadd.f32 %v512_v58, %v496_v47 }
 0x14c   : > { %v1048_v60 = vclamps-f32 %v513_v59, 0.001 }
 0x14e   : > { %v516_v61 = vsub.f32 %v513_v59, %v1048_v60 }
 0x150   : > { %v517_v62 = vmul.f32 %v516_v61, %v1625_v4 }
 0x152   : > { %v518_v63 = vrot.slane %v517_v62, 4 }
 0x154   : > { %v519_v0 = vadd.f32 %v518_v63, %v517_v62 }
 0x156   : > { %v520_v1 = vrot.slane %v519_v0, 2 }
 0x158   : > { %v521_v5 = vadd.f32 %v520_v1, %v519_v0 }
 0x15a   : > { %v522_v6 = vrot.slane %v521_v5, 1 }
 0x15c   : > { %v523_v7 = vadd.f32 %v522_v6, %v521_v5 }
 0x15e   : > { %v524_v8 = vsub.f32 %v1623_v3, %v523_v7 }
 0x160   : > { %v525_v9 = vmul.f32 %v1631_v16, %v524_v8 }
 0x162   : > { %v530_v10 = vrot.slane %v525_v9, %v1618_v2 }
 0x164   : > { %v532_v11 = vmul.f32 %v530_v10, %v1625_v4 }
 0x166   : > { %v533_v12 = vadd.f32 %v532_v11, %v516_v61 }
 0x168   : > { %v1049_v13 = vclamps-f32 %v533_v12, 0.001 }
 0x16a   : > { %v536_v14 = vsub.f32 %v533_v12, %v1049_v13 }
 0x16c   : > { %v537_v15 = vmul.f32 %v536_v14, %v1625_v4 }
 0x16e   : > { %v538_v17 = vrot.slane %v537_v15, 4 }
 0x170   : > { %v539_v18 = vadd.f32 %v538_v17, %v537_v15 }
 0x172   : > { %v540_v19 = vrot.slane %v539_v18, 2 }
 0x174   : > { %v541_v20 = vadd.f32 %v540_v19, %v539_v18 }
 0x176   : > { %v542_v21 = vrot.slane %v541_v20, 1 }
 0x178   : > { %v543_v22 = vadd.f32 %v542_v21, %v541_v20 }
 0x17a   : > { %v544_v23 = vsub.f32 %v1623_v3, %v543_v22 }
 0x17c   : > { %v545_v24 = vmul.f32 %v1631_v16, %v544_v23 }
 0x17e   : > { %v550_v25 = vrot.slane %v545_v24, %v1618_v2 }
 0x180   : > { %v552_v26 = vmul.f32 %v550_v25, %v1625_v4 }
 0x182   : > { %v553_v27 = vadd.f32 %v552_v26, %v536_v14 }
 0x184   : > { %v1050_v28 = vclamps-f32 %v553_v27, 0.001 }
 0x186   : > { %v556_v29 = vsub.f32 %v553_v27, %v1050_v28 }
 0x188   : > { %v557_v30 = vmul.f32 %v556_v29, %v1625_v4 }
 0x18a   : > { %v558_v31 = vrot.slane %v557_v30, 4 }
 0x18c   : > { %v559_v32 = vadd.f32 %v558_v31, %v557_v30 }
 0x18e   : > { %v560_v33 = vrot.slane %v559_v32, 2 }
 0x190   : > { %v561_v34 = vadd.f32 %v560_v33, %v559_v32 }
 0x192   : > { %v562_v35 = vrot.slane %v561_v34, 1 }
 0x194   : > { %v563_v36 = vadd.f32 %v562_v35, %v561_v34 }
 0x196   : > { %v564_v37 = vsub.f32 %v1623_v3, %v563_v36 }
 0x198   : > { %v565_v38 = vmul.f32 %v1631_v16, %v564_v37 }
 0x19a   : > { %v570_v39 = vrot.slane %v565_v38, %v1618_v2 }
 0x19c   : > { %v572_v40 = vmul.f32 %v570_v39, %v1625_v4 }
 0x19e   : > { %v573_v41 = vadd.f32 %v572_v40, %v556_v29 }
 0x1a0   : > { %v1051_v42 = vclamps-f32 %v573_v41, 0.001 }
 0x1a2   : > { %v576_v43 = vsub.f32 %v573_v41, %v1051_v42 }
 0x1a4   : > { %v577_v44 = vmul.f32 %v576_v43, %v1625_v4 }
 0x1a6   : > { %v578_v45 = vrot.slane %v577_v44, 4 }
 0x1a8   : > { %v579_v46 = vadd.f32 %v578_v45, %v577_v44 }
 0x1aa   : > { %v580_v47 = vrot.slane %v579_v46, 2 }
 0x1ac   : > { %v581_v48 = vadd.f32 %v580_v47, %v579_v46 }
 0x1ae   : > { %v582_v49 = vrot.slane %v581_v48, 1 }
 0x1b0   : > { %v583_v50 = vadd.f32 %v582_v49, %v581_v48 }
 0x1b2   : > { %v584_v51 = vsub.f32 %v1623_v3, %v583_v50 }
 0x1b4   : > { %v585_v52 = vmul.f32 %v1631_v16, %v584_v51 }
 0x1b6   : > { %v590_v53 = vrot.slane %v585_v52, %v1618_v2 }
 0x1b8   : > { %v592_v54 = vmul.f32 %v590_v53, %v1625_v4 }
 0x1ba   : > { %v593_v55 = vadd.f32 %v592_v54, %v576_v43 }
 0x1bc   : > { %v1052_v56 = vclamps-f32 %v593_v55, 0.001 }
 0x1be   : > { %v596_v57 = vsub.f32 %v593_v55, %v1052_v56 }
 0x1c0   : > { %v597_v58 = vmul.f32 %v596_v57, %v1625_v4 }
 0x1c2   : > { %v598_v59 = vrot.slane %v597_v58, 4 }
 0x1c4   : > { %v599_v60 = vadd.f32 %v598_v59, %v597_v58 }
 0x1c6   : > { %v600_v61 = vrot.slane %v599_v60, 2 }
 0x1c8   : > { %v601_v62 = vadd.f32 %v600_v61, %v599_v60 }
 0x1ca   : > { %v602_v63 = vrot.slane %v601_v62, 1 }
 0x1cc   : > { %v603_v0 = vadd.f32 %v602_v63, %v601_v62 }
 0x1ce   : > { %v604_v1 = vsub.f32 %v1623_v3, %v603_v0 }
 0x1d0   : > { %v605_v5 = vmul.f32 %v1631_v16, %v604_v1 }
 0x1d2   : > { %v610_v6 = vrot.slane %v605_v5, %v1618_v2 }
 0x1d4   : > { %v612_v7 = vmul.f32 %v610_v6, %v1625_v4 }
 0x1d6   : > { %v613_v8 = vadd.f32 %v612_v7, %v596_v57 }
 0x1d8   : > { %v1053_v9 = vclamps-f32 %v613_v8, 0.001 }
 0x1da   : > { %v616_v10 = vsub.f32 %v613_v8, %v1053_v9 }
 0x1dc   : > { %v617_v11 = vmul.f32 %v616_v10, %v1625_v4 }
 0x1de   : > { %v618_v12 = vrot.slane %v617_v11, 4 }
 0x1e0   : > { %v619_v13 = vadd.f32 %v618_v12, %v617_v11 }
 0x1e2   : > { %v620_v14 = vrot.slane %v619_v13, 2 }
 0x1e4   : > { %v621_v15 = vadd.f32 %v620_v14, %v619_v13 }
 0x1e6   : > { %v622_v17 = vrot.slane %v621_v15, 1 }
 0x1e8   : > { %v623_v18 = vadd.f32 %v622_v17, %v621_v15 }
 0x1ea   : > { %v624_v19 = vsub.f32 %v1623_v3, %v623_v18 }
 0x1ec   : > { %v625_v20 = vmul.f32 %v1631_v16, %v624_v19 }
 0x1ee   : > { %v630_v21 = vrot.slane %v625_v20, %v1618_v2 }
 0x1f0   : > { %v632_v22 = vmul.f32 %v630_v21, %v1625_v4 }
 0x1f2   : > { %v633_v23 = vadd.f32 %v632_v22, %v616_v10 }
 0x1f4   : > { %v1054_v24 = vclamps-f32 %v633_v23, 0.001 }
 0x1f6   : > { %v636_v25 = vsub.f32 %v633_v23, %v1054_v24 }
 0x1f8   : > { %v637_v26 = vmul.f32 %v636_v25, %v1625_v4 }
 0x1fa   : > { %v638_v27 = vrot.slane %v637_v26, 4 }
 0x1fc   : > { %v639_v28 = vadd.f32 %v638_v27, %v637_v26 }
 0x1fe   : > { %v640_v29 = vrot.slane %v639_v28, 2 }
 0x200   : > { %v641_v30 = vadd.f32 %v640_v29, %v639_v28 }
 0x202   : > { %v642_v31 = vrot.slane %v641_v30, 1 }
 0x204   : > { %v643_v32 = vadd.f32 %v642_v31, %v641_v30 }
 0x206   : > { %v644_v33 = vsub.f32 %v1623_v3, %v643_v32 }
 0x208   : > { %v645_v34 = vmul.f32 %v1631_v16, %v644_v33 }
 0x20a   : > { %v650_v35 = vrot.slane %v645_v34, %v1618_v2 }
 0x20c   : > { %v652_v36 = vmul.f32 %v650_v35, %v1625_v4 }
 0x20e   : > { %v653_v37 = vadd.f32 %v652_v36, %v636_v25 }
 0x210   : > { %v1055_v38 = vclamps-f32 %v653_v37, 0.001 }
 0x212   : > { %v656_v39 = vsub.f32 %v653_v37, %v1055_v38 }
 0x214   : > { %v657_v40 = vmul.f32 %v656_v39, %v1625_v4 }
 0x216   : > { %v658_v41 = vrot.slane %v657_v40, 4 }
 0x218   : > { %v659_v42 = vadd.f32 %v658_v41, %v657_v40 }
 0x21a   : > { %v660_v43 = vrot.slane %v659_v42, 2 }
 0x21c   : > { %v661_v44 = vadd.f32 %v660_v43, %v659_v42 }
 0x21e   : > { %v662_v45 = vrot.slane %v661_v44, 1 }
 0x220   : > { %v663_v46 = vadd.f32 %v662_v45, %v661_v44 }
 0x222   : > { %v664_v47 = vsub.f32 %v1623_v3, %v663_v46 }
 0x224   : > { %v665_v48 = vmul.f32 %v1631_v16, %v664_v47 }
 0x226   : > { %v670_v49 = vrot.slane %v665_v48, %v1618_v2 }
 0x228   : > { %v672_v50 = vmul.f32 %v670_v49, %v1625_v4 }
 0x22a   : > { %v673_v51 = vadd.f32 %v672_v50, %v656_v39 }
 0x22c   : > { %v1056_v52 = vclamps-f32 %v673_v51, 0.001 }
 0x22e   : > { %v676_v53 = vsub.f32 %v673_v51, %v1056_v52 }
 0x230   : > { %v677_v54 = vmul.f32 %v676_v53, %v1625_v4 }
 0x232   : > { %v678_v55 = vrot.slane %v677_v54, 4 }
 0x234   : > { %v679_v56 = vadd.f32 %v678_v55, %v677_v54 }
 0x236   : > { %v680_v57 = vrot.slane %v679_v56, 2 }
 0x238   : > { %v681_v58 = vadd.f32 %v680_v57, %v679_v56 }
 0x23a   : > { %v682_v59 = vrot.slane %v681_v58, 1 }
 0x23c   : > { %v683_v60 = vadd.f32 %v682_v59, %v681_v58 }
 0x23e   : > { %v684_v61 = vsub.f32 %v1623_v3, %v683_v60 }
 0x240   : > { %v685_v62 = vmul.f32 %v1631_v16, %v684_v61 }
 0x242   : > { %v690_v63 = vrot.slane %v685_v62, %v1618_v2 }
 0x244   : > { %v692_v0 = vmul.f32 %v690_v63, %v1625_v4 }
 0x246   : > { %v693_v1 = vadd.f32 %v692_v0, %v676_v53 }
 0x248   : > { %v1057_v5 = vclamps-f32 %v693_v1, 0.001 }
 0x24a   : > { %v696_v6 = vsub.f32 %v693_v1, %v1057_v5 }
 0x24c   : > { %v697_v7 = vmul.f32 %v696_v6, %v1625_v4 }
 0x24e   : > { %v698_v8 = vrot.slane %v697_v7, 4 }
 0x250   : > { %v699_v9 = vadd.f32 %v698_v8, %v697_v7 }
 0x252   : > { %v700_v10 = vrot.slane %v699_v9, 2 }
 0x254   : > { %v701_v11 = vadd.f32 %v700_v10, %v699_v9 }
 0x256   : > { %v702_v12 = vrot.slane %v701_v11, 1 }
 0x258   : > { %v703_v13 = vadd.f32 %v702_v12, %v701_v11 }
 0x25a   : > { %v704_v14 = vsub.f32 %v1623_v3, %v703_v13 }
 0x25c   : > { %v705_v15 = vmul.f32 %v1631_v16, %v704_v14 }
 0x25e   : > { %v710_v17 = vrot.slane %v705_v15, %v1618_v2 }
 0x260   : > { %v712_v18 = vmul.f32 %v710_v17, %v1625_v4 }
 0x262   : > { %v713_v19 = vadd.f32 %v712_v18, %v696_v6 }
 0x264   : > { %v1058_v20 = vclamps-f32 %v713_v19, 0.001 }
 0x266   : > { %v716_v21 = vsub.f32 %v713_v19, %v1058_v20 }
 0x268   : > { %v717_v22 = vmul.f32 %v716_v21, %v1625_v4 }
 0x26a   : > { %v718_v23 = vrot.slane %v717_v22, 4 }
 0x26c   : > { %v719_v24 = vadd.f32 %v718_v23, %v717_v22 }
 0x26e   : > { %v720_v25 = vrot.slane %v719_v24, 2 }
 0x270   : > { %v721_v26 = vadd.f32 %v720_v25, %v719_v24 }
 0x272   : > { %v722_v27 = vrot.slane %v721_v26, 1 }
 0x274   : > { %v723_v28 = vadd.f32 %v722_v27, %v721_v26 }
 0x276   : > { %v724_v29 = vsub.f32 %v1623_v3, %v723_v28 }
 0x278   : > { %v725_v30 = vmul.f32 %v1631_v16, %v724_v29 }
 0x27a   : > { %v730_v31 = vrot.slane %v725_v30, %v1618_v2 }
 0x27c   : > { %v732_v32 = vmul.f32 %v730_v31, %v1625_v4 }
 0x27e   : > { %v733_v33 = vadd.f32 %v732_v32, %v716_v21 }
 0x280   : > { %v1059_v34 = vclamps-f32 %v733_v33, 0.001 }
 0x282   : > { %v736_v35 = vsub.f32 %v733_v33, %v1059_v34 }
 0x284   : > { %v737_v36 = vmul.f32 %v736_v35, %v1625_v4 }
 0x286   : > { %v738_v37 = vrot.slane %v737_v36, 4 }
 0x288   : > { %v739_v38 = vadd.f32 %v738_v37, %v737_v36 }
 0x28a   : > { %v740_v39 = vrot.slane %v739_v38, 2 }
 0x28c   : > { %v741_v40 = vadd.f32 %v740_v39, %v739_v38 }
 0x28e   : > { %v742_v41 = vrot.slane %v741_v40, 1 }
 0x290   : > { %v743_v42 = vadd.f32 %v742_v41, %v741_v40 }
 0x292   : > { %v744_v43 = vsub.f32 %v1623_v3, %v743_v42 }
 0x294   : > { %v745_v44 = vmul.f32 %v1631_v16, %v744_v43 }
 0x296   : > { %v750_v45 = vrot.slane %v745_v44, %v1618_v2 }
 0x298   : > { %v752_v46 = vmul.f32 %v750_v45, %v1625_v4 }
 0x29a   : > { %v753_v47 = vadd.f32 %v752_v46, %v736_v35 }
 0x29c   : > { %v1060_v48 = vclamps-f32 %v753_v47, 0.001 }
 0x29e   : > { %v756_v49 = vsub.f32 %v753_v47, %v1060_v48 }
 0x2a0   : > { %v757_v50 = vmul.f32 %v756_v49, %v1625_v4 }
 0x2a2   : > { %v758_v51 = vrot.slane %v757_v50, 4 }
 0x2a4   : > { %v759_v52 = vadd.f32 %v758_v51, %v757_v50 }
 0x2a6   : > { %v760_v53 = vrot.slane %v759_v52, 2 }
 0x2a8   : > { %v761_v54 = vadd.f32 %v760_v53, %v759_v52 }
 0x2aa   : > { %v762_v55 = vrot.slane %v761_v54, 1 }
 0x2ac   : > { %v763_v56 = vadd.f32 %v762_v55, %v761_v54 }
 0x2ae   : > { %v764_v57 = vsub.f32 %v1623_v3, %v763_v56 }
 0x2b0   : > { %v765_v58 = vmul.f32 %v1631_v16, %v764_v57 }
 0x2b2   : > { %v770_v59 = vrot.slane %v765_v58, %v1618_v2 }
 0x2b4   : > { %v772_v60 = vmul.f32 %v770_v59, %v1625_v4 }
 0x2b6   : > { %v773_v61 = vadd.f32 %v772_v60, %v756_v49 }
 0x2b8   : > { %v1061_v62 = vclamps-f32 %v773_v61, 0.001 }
 0x2ba   : > { %v776_v3 = vsub.f32 %v773_v61, %v1061_v62 }
 0x2bc   : > { %v778_v2 = vsub.f32 %v776_v3, %v756_v49  ;;  %777 = vst [vmem:[%s324_s15] sm:$0xff] %v776_v3  ;;  %v787_v4 = vmul.f32 %v776_v3, %v776_v3 }
 0x2bd   : > { %1239 = shalt.err (!%p1236_p12)
}
 0x2be   : > { %s1240_s13 = scalar_lea.hbm %s1749_s7, 128  ;;  %s1244_s8 = scalar_lea.hbm %s1870_s3, 512 }
 0x2bf   : > { %p1241_p4 = scmp.ne.s32.totalorder %s1749_s7, %s1240_s13  ;;  %p1245_p3 = scmp.lt.u32.totalorder %s1749_s7, %s1870_s3 }
 0x2c0   : > { %p1246_p8 = scmp.lt.u32.totalorder %s1244_s8, %s1240_s13  ;;  %p1248_p6 = scmp.lt.u32.totalorder %s1240_s13, %s1749_s7 }
 0x2c1   : > { %p1242_p5 = pnand %p1241_p4, %p1894_p7 }
 0x2c2   : > { %p1247_p0 = por %p1246_p8, %p1245_p3 }
 0x2c3   : > { %p1243_p13 = pneg %p1242_p5 }
 0x2c4   : > { %p1249_p10 = por %p1248_p6, %p1247_p0 }
 0x2c6   : > { %p1250_p11 = pnand %p1249_p10, %p1243_p13 }
 0x2c8   : > { %1253 = shalt.err (!%p1250_p11)
}
 0x2c9   : > { %1075 = dma.vmem_to_hbm [thread:$0]  (%p1894_p7), %s1744_s11, 128, %s1749_s7, %s796_s21   ;;  %v779_v16 = vmul.f32 %v778_v2, %v778_v2  ;;  %v788_v63 = vrot.slane %v787_v4, 4 }
 0x2ca   : > { %s330_s22 = scalar_lea.vmem [#allocation8], %s1598_s30  ;;  %s800_s17 = sand.u32 1, %s1466_s26  }
 0x2cb   : > { %v780_v0 = vrot.slane %v779_v16, 4  ;;  %v789_v1 = vadd.f32 %v788_v63, %v787_v4  ;;  %s834_s16 = sshll.u32 %s330_s22, 4  ;;  %s1066_s0 = sshll.u32 %s1739_s29, 4  ;;  %s1777_s16 = int_to_ptr.vmem [resolvable:$true] %s834_s16 }
 0x2cc   : > { %s336_s6 = scalar_lea.vmem [#allocation10], %s1598_s30  ;;  %s1782_s27 = scalar_lea.hbm %s1871_s4, %s1066_s0 }
 0x2cd   : > { %v781_v5 = vadd.f32 %v780_v0, %v779_v16  ;;  %v790_v6 = vrot.slane %v789_v1, 2  ;;  %s849_s11 = sshll.u32 %s336_s6, 4  ;;  %s1789_s13 = scalar_lea.hbm %s1872_s5, %s1066_s0  ;;  %s1784_s11 = int_to_ptr.vmem [resolvable:$true] %s849_s11 }
 0x2ce   : > { %s1791_s30 = scalar_lea.sflag [#allocation9], %s800_s17  ;;  %s1254_s24 = scalar_lea.vmem %s1777_s16, 16 }
 0x2cf   : > { %v782_v7 = vrot.slane %v781_v5, 2  ;;  %v791_v8 = vadd.f32 %v790_v6, %v789_v1  ;;  %p1255_p1 = scmp.ne.s32.totalorder %s1777_s16, %s1254_s24  ;;  %s1393_s28 = smov [#allocation8]  }
 0x2d0   : > { %s1258_s8 = sshll.u32 %s1393_s28, 4  ;;  %s1259_s8 = int_to_ptr.vmem [resolvable:$false] %s1258_s8 }
 0x2d1   : > { %v783_v9 = vadd.f32 %v782_v7, %v781_v5  ;;  %v792_v10 = vrot.slane %v791_v8, 1  ;;  %p1256_p2 = pnand %p1255_p1, %p1894_p7  ;;  %s1260_s15 = scalar_lea.vmem %s1259_s8, 32 }
 0x2d2   : > { %p1261_p12 = scmp.lt.s32.totalorder %s1777_s16, %s1259_s8  ;;  %p1262_p4 = scmp.lt.s32.totalorder %s1260_s15, %s1254_s24 }
 0x2d3   : > { %v784_v11 = vrot.slane %v783_v9, 1  ;;  %v793_v12 = vadd.f32 %v792_v10, %v791_v8  ;;  %p1257_p9 = pneg %p1256_p2 }
 0x2d4   : > { %p1263_p5 = por %p1262_p4, %p1261_p12 }
 0x2d5   : > { %v785_v13 = vadd.f32 %v784_v11, %v783_v9  ;;  %794 = vst [vmem:[%s336_s6] sm:$0x1] %v793_v12 }
 0x2d6   : > { %p1264_p13 = pnand %p1263_p5, %p1257_p9 }
 0x2d7   : > { %786 = vst [vmem:[%s330_s22] sm:$0x1] %v785_v13 }
 0x2d8   : > { %1267 = shalt.err (!%p1264_p13)
}
 0x2d9   : > { %s1268_s10 = scalar_lea.hbm %s1782_s27, 16  ;;  %s1272_s0 = scalar_lea.hbm %s1871_s4, 64 }
 0x2da   : > { %p1269_p3 = scmp.ne.s32.totalorder %s1782_s27, %s1268_s10  ;;  %p1273_p6 = scmp.lt.u32.totalorder %s1782_s27, %s1871_s4 }
 0x2db   : > { %p1274_p10 = scmp.lt.u32.totalorder %s1272_s0, %s1268_s10  ;;  %p1276_p1 = scmp.lt.u32.totalorder %s1268_s10, %s1782_s27 }
 0x2dc   : > { %p1270_p8 = pnand %p1269_p3, %p1894_p7 }
 0x2dd   : > { %p1275_p11 = por %p1274_p10, %p1273_p6 }
 0x2de   : > { %p1271_p0 = pneg %p1270_p8 }
 0x2df   : > { %p1277_p2 = por %p1276_p1, %p1275_p11 }
 0x2e1   : > { %p1278_p9 = pnand %p1277_p2, %p1271_p0 }
 0x2e3   : > { %1281 = shalt.err (!%p1278_p9)
}
 0x2e4   : > { %1076 = dma.vmem_to_hbm [thread:$0]  (%p1894_p7), %s1777_s16, 16, %s1782_s27, %s1791_s30  }
 0x2e5   : > { %s1282_s21 = scalar_lea.vmem %s1784_s11, 16  ;;  %s1394_s26 = smov [#allocation10]  }
 0x2e6   : > { %p1283_p12 = scmp.ne.s32.totalorder %s1784_s11, %s1282_s21  ;;  %s1286_s29 = sshll.u32 %s1394_s26, 4  ;;  %s1287_s29 = int_to_ptr.vmem [resolvable:$false] %s1286_s29 }
 0x2e7   : > { %s1288_s24 = scalar_lea.vmem %s1287_s29, 32  ;;  %p1289_p13 = scmp.lt.s32.totalorder %s1784_s11, %s1287_s29 }
 0x2e8   : > { %p1284_p4 = pnand %p1283_p12, %p1894_p7  ;;  %p1290_p3 = scmp.lt.s32.totalorder %s1288_s24, %s1282_s21 }
 0x2ea   : > { %p1285_p5 = pneg %p1284_p4  ;;  %p1291_p8 = por %p1290_p3, %p1289_p13 }
 0x2ec   : > { %p1292_p0 = pnand %p1291_p8, %p1285_p5 }
 0x2ee   : > { %1295 = shalt.err (!%p1292_p0)
}
 0x2ef   : > { %s1296_s16 = scalar_lea.hbm %s1789_s13, 16  ;;  %s1300_s8 = scalar_lea.hbm %s1872_s5, 64 }
 0x2f0   : > { %p1297_p6 = scmp.ne.s32.totalorder %s1789_s13, %s1296_s16  ;;  %p1301_p1 = scmp.lt.u32.totalorder %s1789_s13, %s1872_s5 }
 0x2f1   : > { %p1302_p2 = scmp.lt.u32.totalorder %s1300_s8, %s1296_s16  ;;  %p1304_p12 = scmp.lt.u32.totalorder %s1296_s16, %s1789_s13 }
 0x2f2   : > { %p1298_p10 = pnand %p1297_p6, %p1894_p7 }
 0x2f3   : > { %p1303_p9 = por %p1302_p2, %p1301_p1 }
 0x2f4   : > { %p1299_p11 = pneg %p1298_p10 }
 0x2f5   : > { %p1305_p4 = por %p1304_p12, %p1303_p9 }
 0x2f7   : > { %p1306_p5 = pnand %p1305_p4, %p1299_p11 }
 0x2f9   : > { %1309 = shalt.err (!%p1306_p5)
}
 0x2fa   : > { %1077 = dma.vmem_to_hbm [thread:$0]  (%p1894_p7), %s1784_s11, 16, %s1789_s13, %s1791_s30  }
 0x2fb PF: > { %p1099_p13 = scmp.ge.s32.totalorder %s1388_s25, 2  ;;  %s861_s22 = sand.u32 1, %s1360_s18  }
 0x2fc   : > { %p1895_p3 = scmp.ne.s32.totalorder %s1886_s12, 0  ;;  %s862_s17 = scalar_lea.sflag [#allocation4], %s861_s22 }
 0x2fe   : > { %p1089_p8 = pnand %p1099_p13, %p1895_p3 }
 0x300   : > { %1351 = dma.done.wait (!%p1089_p8), %s862_s17, 128  }
 0x301   : > { %1353 = vsyncadd (!%p1089_p8), %s862_s17, 4294967168  ;;  %s1896_s0 = sadd.s32 4294967294, %s1388_s25  }
 0x302   : > { %s870_s6 = sand.u32 1, %s1896_s0  }
 0x303   : > { %s871_s7 = scalar_lea.sflag [#allocation9], %s870_s6 }
 0x304   : > { %1355 = dma.done.wait (!%p1089_p8), %s871_s7, 32  }
 0x305   : > { %1357 = vsyncadd (!%p1089_p8), %s871_s7, 4294967264  ;;  %s28_s25 = sadd.s32 1, %s1388_s25   ;;  %s1897_s22 = sld [smem:[#allocation15_spill]] }
 0x306   : > { %p25_p7 = scmp.ge.s32.totalorder %s28_s25, 6   ;;  %s1898_s9 = sld [smem:[#allocation16_spill]] }
 0x307   : > { %s1899_s24 = sld [smem:[#allocation17_spill]]  ;;  %s1900_s18 = smov %s1364_s19 }
 0x308   : > { %s1901_s19 = smov %s1368_s20  ;;  %s1902_s20 = smov %s1511_s14 }
 0x309   : > { %s1903_s21 = smov %s1380_s23  ;;  %27 = sbr.rel (!%p25_p7) target bundleno = 13 (0xd), region = 125 }
 0x30c   : > { %s1904_s23 = smov %s1898_s9 }
 0x310   :  { %883 = vsyncpa [#allocation3], 1 }
 0x311   :  { %885 = vsyncpa [#allocation3 + $0x1], 1 }
 0x312   :  { %886 = vsyncpa [#allocation6], 1 }
 0x313   :  { %888 = vsyncpa [#allocation6 + $0x1], 1 }
 0x314   :  { %889 = vsyncpa [#allocation4], 1 }
 0x315   :  { %891 = vsyncpa [#allocation4 + $0x1], 1 }
 0x316   :  { %892 = vsyncpa [#allocation9], 1 }
 0x317   :  { %894 = vsyncpa [#allocation9 + $0x1], 1 }

</bundles_post_ra>
